<compile_context>
chip_gen: v5e
topology: v5e:2x2
jax: 0.10.0
libtpu: 0.0.40
codegen_flags: <defaults>
</compile_context>

<pallas_src>
import functools
import math

import jax
import jax.numpy as jnp
from jax.experimental import pallas as pl
from jax.experimental.pallas import tpu as pltpu


# ---------------------------------------------------------------------------
# Pallas kernel: one grid step processes Bb batch elements.
# ---------------------------------------------------------------------------
def _self_attn_block_kernel(
    x_ref,        # (Bb, S, D)   f32
    wqkv_ref,     # (D, 5*D)     cdt  [Wq' | Wk' | Wv' | Wq'@P | Wk'@P]  (norm+scale folded)
    wo_ref,       # (D, D)       cdt
    w13_ref,      # (D, 2*hid)   cdt  [W1' | W3']  (ffn-norm folded)
    w2_ref,       # (hid, D)     cdt
    cos_ref,      # (Bb*S, D)    f32  full-width RoPE cos table
    ssin_ref,     # (Bb*S, D)    f32  full-width signed RoPE sin table
    mask_ref,     # (H*S, D)     f32  head block mask
    sel_ref,      # (S, H*S)     f32  row-gather (selection) matrix
    out_ref,      # (Bb, S, D)   f32
    *, eps,
):
    Bb, S, D = x_ref.shape
    HS = mask_ref.shape[0]
    H = HS // S
    hidden = w2_ref.shape[0]
    M = Bb * S
    cdt = wqkv_ref.dtype

    x = x_ref[...].reshape(M, D)                          # fold batch into M (free)

    # ---- attention RMSNorm (affine weight folded into wqkv rows) ----------------
    var = jnp.mean(x * x, axis=-1, keepdims=True)
    xn = x * jax.lax.rsqrt(var + eps)

    # ---- fused QKV (+ rotate-half shuffle) projection ----------------------------
    qkv = jnp.dot(xn.astype(cdt), wqkv_ref[...],
                  preferred_element_type=jnp.float32)     # (M, 5D)
    q = qkv[:, 0:D]
    k = qkv[:, D:2 * D]
    v = qkv[:, 2 * D:3 * D]
    q_sh = qkv[:, 3 * D:4 * D]
    k_sh = qkv[:, 4 * D:5 * D]

    # ---- slab-wide RoPE (sign folded into the sin table) -------------------------
    cos = cos_ref[...]
    ssin = ssin_ref[...]
    q_rot = q * cos + q_sh * ssin
    k_rot = k * cos + k_sh * ssin

    # ---- all-heads attention via head-replicated, channel-masked Q ---------------
    q3 = q_rot.reshape(Bb, S, D)
    k3 = k_rot.reshape(Bb, S, D)
    v3 = v.reshape(Bb, S, D)
    mask = mask_ref[...]                                  # (H*S, D)

    # Row h*S+s of q_bd holds q[s] masked to head h's channels.
    q_bd = jnp.concatenate([q3] * H, axis=1) * mask[None]  # (Bb, H*S, D)

    # 1/sqrt(head_dim) already folded into Wq columns.
    scores = jnp.einsum("bnd,bkd->bnk", q_bd.astype(cdt), k3.astype(cdt),
                        preferred_element_type=jnp.float32)           # (Bb, H*S, S)

    scores = scores - jnp.max(scores, axis=-1, keepdims=True)
    p = jnp.exp(scores)
    p = p * pl.reciprocal(jnp.sum(p, axis=-1, keepdims=True), approx=True)

    o_pk = jnp.einsum("bnk,bkd->bnd", p.astype(cdt), v3.astype(cdt),
                      preferred_element_type=jnp.float32)             # (Bb, H*S, D)
    o_pk = o_pk * mask[None]                               # keep head-h columns only

    sel = jnp.broadcast_to(sel_ref[...][None], (Bb, S, HS))
    attn = jnp.einsum("bsn,bnd->bsd", sel.astype(cdt), o_pk.astype(cdt),
                      preferred_element_type=jnp.float32)             # (Bb, S, D)
    attn = attn.reshape(M, D)

    # ---- output projection + residual --------------------------------------------
    h = x + jnp.dot(attn.astype(cdt), wo_ref[...],
                    preferred_element_type=jnp.float32)

    # ---- FFN RMSNorm + SwiGLU feed-forward + residual -----------------------------
    var2 = jnp.mean(h * h, axis=-1, keepdims=True)
    hn = h * jax.lax.rsqrt(var2 + eps)
    h13 = jnp.dot(hn.astype(cdt), w13_ref[...],
                  preferred_element_type=jnp.float32)     # (M, 2*hidden)
    h1 = h13[:, :hidden]
    h3 = h13[:, hidden:]
    hid = h1 * jax.nn.sigmoid(h1) * h3                    # silu(w1 x) * w3 x
    ffn = jnp.dot(hid.astype(cdt), w2_ref[...],
                  preferred_element_type=jnp.float32)

    out_ref[...] = (h + ffn).reshape(Bb, S, D).astype(out_ref.dtype)


# ---------------------------------------------------------------------------
# Wrapper: parameter plumbing + pallas_call
# ---------------------------------------------------------------------------
def _num_tensorcores() -> int:
    try:
        kind = jax.devices()[0].device_kind.lower()
    except Exception:
        return 1
    return 2 if ("v7" in kind or "7x" in kind) else 1


def self_attention_block(x, params, *, n_heads, eps=1e-5, rope_theta=10000.0,
                         compute_dtype=jnp.float32, grid_steps=None):
    B, S, D = x.shape
    H = n_heads
    hd = D // H
    hd2 = hd // 2
    hidden = params["w1"].shape[1]

    # grid: 1 step on single-TC chips (v5e/v6e), batch-parallel steps on v7x.
    if grid_steps is None:
        grid_steps = _num_tensorcores()
    if grid_steps <= 0 or B % grid_steps != 0:
        grid_steps = 1
    Bb = B // grid_steps
    M = Bb * S

    # fold RMSNorm affine weights into the projection weight rows (exact)
    attn_w = params["attn_norm_w"][0][:, None]            # (D, 1)
    ffn_w = params["ffn_norm_w"][0][:, None]              # (D, 1)
    # fold 1/sqrt(head_dim) attention scale into Wq (RoPE is a rotation -> exact)
    wq = (params["wq"] * attn_w) * (1.0 / math.sqrt(hd))
    wk = params["wk"] * attn_w
    wv = params["wv"] * attn_w

    # per-head even/odd de-interleave permutation of wq / wk columns
    perm_head = jnp.concatenate([jnp.arange(0, hd, 2), jnp.arange(1, hd, 2)])
    perm = jnp.concatenate([h * hd + perm_head for h in range(H)])
    wq_p = wq[:, perm]
    wk_p = wk[:, perm]

    # fold the RoPE "rotate-half" lane shuffle into extra weight columns
    col = jnp.arange(D)
    j = col % hd
    swapped = (col // hd) * hd + jnp.where(j < hd2, j + hd2, j - hd2)
    wq_s = wq_p[:, swapped]
    wk_s = wk_p[:, swapped]

    wqkv = jnp.concatenate([wq_p, wk_p, wv, wq_s, wk_s], axis=1).astype(compute_dtype)
    w13 = jnp.concatenate([params["w1"] * ffn_w, params["w3"] * ffn_w],
                          axis=1).astype(compute_dtype)
    wo = params["wo"].astype(compute_dtype)
    w2 = params["w2"].astype(compute_dtype)

    # full-width RoPE tables (theta = hp.rope_freq), rows = Bb*S, cols = D
    freqs = 1.0 / (rope_theta ** (jnp.arange(0, hd, 2, dtype=jnp.float32) / hd))
    ang = jnp.arange(S, dtype=jnp.float32)[:, None] * freqs[None, :]    # (S, hd2)
    cos_h = jnp.concatenate([jnp.cos(ang), jnp.cos(ang)], axis=1)       # (S, hd)
    sin_h = jnp.concatenate([-jnp.sin(ang), jnp.sin(ang)], axis=1)      # (S, hd)
    cos_full = jnp.tile(jnp.tile(cos_h, (1, H)), (Bb, 1))               # (M, D)
    ssin_full = jnp.tile(jnp.tile(sin_h, (1, H)), (Bb, 1))              # (M, D)

    # head block mask (H*S, D) and row-gather matrix (S, H*S)
    n_idx = jnp.arange(H * S)
    mask_head = (n_idx[:, None] // S == jnp.arange(D)[None, :] // hd).astype(jnp.float32)
    sel = (n_idx[None, :] % S == jnp.arange(S)[:, None]).astype(jnp.float32)

    kernel = functools.partial(_self_attn_block_kernel, eps=eps)
    const = lambda b: (0, 0)          # resident weights / tables: same block each step

    return pl.pallas_call(
        kernel,
        out_shape=jax.ShapeDtypeStruct((B, S, D), jnp.float32),
        grid_spec=pltpu.PrefetchScalarGridSpec(
            num_scalar_prefetch=0,
            grid=(grid_steps,),
            in_specs=[
                pl.BlockSpec((Bb, S, D), lambda b: (b, 0, 0)),   # x
                pl.BlockSpec((D, 5 * D), const),                 # fused Wq|Wk|Wv|WqP|WkP
                pl.BlockSpec((D, D), const),                     # wo
                pl.BlockSpec((D, 2 * hidden), const),            # fused W1|W3
                pl.BlockSpec((hidden, D), const),                # w2
                pl.BlockSpec((M, D), const),                     # RoPE cos
                pl.BlockSpec((M, D), const),                     # RoPE signed sin
                pl.BlockSpec((H * S, D), const),                 # head block mask
                pl.BlockSpec((S, H * S), const),                 # row gather matrix
            ],
            out_specs=pl.BlockSpec((Bb, S, D), lambda b: (b, 0, 0)),
        ),
        compiler_params=pltpu.CompilerParams(
            dimension_semantics=("parallel",),
            vmem_limit_bytes=32 * 1024 * 1024,
        ),
    )(x, wqkv, wo, w13, w2, cos_full, ssin_full, mask_head, sel)


# ---------------------------------------------------------------------------
# Pure-JAX reference (mirrors the PyTorch module, incl. interleaved RoPE)
# ---------------------------------------------------------------------------
def reference_block(x, params, *, n_heads, eps=1e-5):
    B, S, D = x.shape
    hd = D // n_heads

    def rmsnorm(v, w):
        var = jnp.mean(v * v, axis=-1, keepdims=True)
        return v * jax.lax.rsqrt(var + eps) * w[0]

    xn = rmsnorm(x, params["attn_norm_w"])
    q = xn @ params["wq"]
    k = xn @ params["wk"]
    v = xn @ params["wv"]
    q = q.reshape(B, S, n_heads, hd)
    k = k.reshape(B, S, n_heads, hd)
    v = v.reshape(B, S, n_heads, hd)

    theta = 10000.0
    freqs = 1.0 / (theta ** (jnp.arange(0, hd, 2, dtype=jnp.float32) / hd))
    ang = jnp.arange(S, dtype=jnp.float32)[:, None] * freqs[None, :]   # (S, hd//2)
    cos = jnp.cos(ang)[None, :, None, :]
    sin = jnp.sin(ang)[None, :, None, :]

    def rope(t):
        tr = t.reshape(B, S, n_heads, hd // 2, 2)
        a, b = tr[..., 0], tr[..., 1]
        return jnp.stack([a * cos - b * sin, a * sin + b * cos], axis=-1).reshape(
            B, S, n_heads, hd)

    q, k = rope(q), rope(k)
    q = q.transpose(0, 2, 1, 3)
    k = k.transpose(0, 2, 1, 3)
    v = v.transpose(0, 2, 1, 3)

    scores = jnp.einsum("bhqd,bhkd->bhqk", q, k) / math.sqrt(hd)
    probs = jax.nn.softmax(scores, axis=-1)
    o = jnp.einsum("bhqk,bhkd->bhqd", probs, v)
    o = o.transpose(0, 2, 1, 3).reshape(B, S, D)
    h = x + o @ params["wo"]

    hn = rmsnorm(h, params["ffn_norm_w"])
    hid = jax.nn.silu(hn @ params["w1"]) * (hn @ params["w3"])
    return h + hid @ params["w2"]


# ---------------------------------------------------------------------------
if __name__ == "__main__":
    # dim=64, n_heads=4 (head_dim=16), seq=16, batch=2, multiple_of=256 -> hidden=256.
    B, S, D, H = 2, 16, 64, 4
    multiple_of = 256
    hidden = int(2 * (4 * D) / 3)
    hidden = hidden + multiple_of - 1
    hidden = multiple_of * (hidden // multiple_of)

    key = jax.random.PRNGKey(0)
    ks = jax.random.split(key, 8)
    scale = 0.05
    params = {
        "wq": scale * jax.random.normal(ks[0], (D, H * (D // H)), jnp.float32),
        "wk": scale * jax.random.normal(ks[1], (D, H * (D // H)), jnp.float32),
        "wv": scale * jax.random.normal(ks[2], (D, H * (D // H)), jnp.float32),
        "wo": scale * jax.random.normal(ks[3], (H * (D // H), D), jnp.float32),
        "w1": scale * jax.random.normal(ks[4], (D, hidden), jnp.float32),
        "w3": scale * jax.random.normal(ks[5], (D, hidden), jnp.float32),
        "w2": scale * jax.random.normal(ks[6], (hidden, D), jnp.float32),
        # RMSLayerNorm.reset_parameters() -> ones
        "attn_norm_w": jnp.ones((1, D), jnp.float32),
        "ffn_norm_w": jnp.ones((1, D), jnp.float32),
    }
    x = jax.random.normal(ks[7], (B, S, D), jnp.float32)

    ref = reference_block(x, params, n_heads=H, eps=1e-5)

    # f32 matmul path (default; v5e)
    out = self_attention_block(x, params, n_heads=H, eps=1e-5)
    out = jax.block_until_ready(out)
    assert out.shape == (B, S, D)
    assert jnp.allclose(out, ref, rtol=1e-3, atol=2e-3), (
        float(jnp.max(jnp.abs(out - ref))))

    # bf16 matmul-operand path (v6e / v7x recommendation) — looser tolerance.
    out_bf16 = self_attention_block(x, params, n_heads=H, eps=1e-5,
                                    compute_dtype=jnp.bfloat16)
    out_bf16 = jax.block_until_ready(out_bf16)
    assert jnp.allclose(out_bf16, ref, rtol=5e-2, atol=5e-2), (
        float(jnp.max(jnp.abs(out_bf16 - ref))))

    # TODO(synk): dropout (hp.dropout=0.0) and the KVCache inference path are no-ops here.
    print("KERNEL_OK")
</pallas_src>

<mosaic_0001>
module attributes {stable_mosaic.version = 11 : i64} {
  func.func @_self_attn_block_kernel(%arg0: i32, %arg1: memref<2x16x64xf32, #tpu.memory_space<vmem>>, %arg2: memref<64x320xf32, #tpu.memory_space<vmem>>, %arg3: memref<64x64xf32, #tpu.memory_space<vmem>>, %arg4: memref<64x512xf32, #tpu.memory_space<vmem>>, %arg5: memref<256x64xf32, #tpu.memory_space<vmem>>, %arg6: memref<32x64xf32, #tpu.memory_space<vmem>>, %arg7: memref<32x64xf32, #tpu.memory_space<vmem>>, %arg8: memref<64x64xf32, #tpu.memory_space<vmem>>, %arg9: memref<16x64xf32, #tpu.memory_space<vmem>>, %arg10: memref<2x16x64xf32, #tpu.memory_space<vmem>>) attributes {dimension_semantics = [#tpu.dimension_semantics<parallel>], iteration_bounds = array<i64: 1>, scalar_prefetch = 0 : i64, scratch_operands = 0 : i64, tpu.core_type = #tpu.core_type<tc>, window_params = [{transform_indices = @transform_0, window_bounds = array<i64: 2, 16, 64>}, {pipeline_mode = #tpu.pipeline_mode<synchronous>, transform_indices = @transform_1, window_bounds = array<i64: 64, 320>}, {pipeline_mode = #tpu.pipeline_mode<synchronous>, transform_indices = @transform_2, window_bounds = array<i64: 64, 64>}, {pipeline_mode = #tpu.pipeline_mode<synchronous>, transform_indices = @transform_3, window_bounds = array<i64: 64, 512>}, {pipeline_mode = #tpu.pipeline_mode<synchronous>, transform_indices = @transform_4, window_bounds = array<i64: 256, 64>}, {pipeline_mode = #tpu.pipeline_mode<synchronous>, transform_indices = @transform_5, window_bounds = array<i64: 32, 64>}, {pipeline_mode = #tpu.pipeline_mode<synchronous>, transform_indices = @transform_6, window_bounds = array<i64: 32, 64>}, {pipeline_mode = #tpu.pipeline_mode<synchronous>, transform_indices = @transform_7, window_bounds = array<i64: 64, 64>}, {pipeline_mode = #tpu.pipeline_mode<synchronous>, transform_indices = @transform_8, window_bounds = array<i64: 16, 64>}, {transform_indices = @transform_9, window_bounds = array<i64: 2, 16, 64>}]} {
    %c0 = arith.constant 0 : index
    %c0_0 = arith.constant 0 : index
    %c0_1 = arith.constant 0 : index
    %0 = vector.load %arg1[%c0, %c0_0, %c0_1] : memref<2x16x64xf32, #tpu.memory_space<vmem>>, vector<2x16x64xf32>
    %1 = vector.shape_cast %0 : vector<2x16x64xf32> to vector<32x64xf32>
    %2 = arith.mulf %1, %1 : vector<32x64xf32>
    %cst = arith.constant dense<0.000000e+00> : vector<32xf32>
    %3 = vector.multi_reduction <add>, %2, %cst [1] : vector<32x64xf32> to vector<32xf32>
    %4 = vector.shape_cast %3 : vector<32xf32> to vector<32x1xf32>
    %cst_2 = arith.constant 6.400000e+01 : f32
    %5 = vector.broadcast %cst_2 : f32 to vector<32x1xf32>
    %6 = arith.divf %4, %5 : vector<32x1xf32>
    %cst_3 = arith.constant 9.99999974E-6 : f32
    %7 = vector.broadcast %cst_3 : f32 to vector<32x1xf32>
    %8 = arith.addf %6, %7 : vector<32x1xf32>
    %9 = math.rsqrt %8 : vector<32x1xf32>
    %10 = vector.broadcast %9 : vector<32x1xf32> to vector<32x64xf32>
    %11 = arith.mulf %1, %10 : vector<32x64xf32>
    %c0_4 = arith.constant 0 : index
    %c0_5 = arith.constant 0 : index
    %12 = vector.load %arg2[%c0_4, %c0_5] : memref<64x320xf32, #tpu.memory_space<vmem>>, vector<64x320xf32>
    %cst_6 = arith.constant dense<0.000000e+00> : vector<32x320xf32>
    %13 = tpu.matmul %11, %12, %cst_6 {dimension_numbers = #tpu.dot_dimension_numbers<[1], [0], [0], [1], [0, 0, 1, 1], [], []>} : vector<32x64xf32>, vector<64x320xf32>, vector<32x320xf32> -> vector<32x320xf32>
    %14 = vector.extract_strided_slice %13 {offsets = [0, 0], sizes = [32, 64], strides = [1, 1]} : vector<32x320xf32> to vector<32x64xf32>
    %15 = vector.extract_strided_slice %13 {offsets = [0, 64], sizes = [32, 64], strides = [1, 1]} : vector<32x320xf32> to vector<32x64xf32>
    %16 = vector.extract_strided_slice %13 {offsets = [0, 128], sizes = [32, 64], strides = [1, 1]} : vector<32x320xf32> to vector<32x64xf32>
    %17 = vector.extract_strided_slice %13 {offsets = [0, 192], sizes = [32, 64], strides = [1, 1]} : vector<32x320xf32> to vector<32x64xf32>
    %18 = vector.extract_strided_slice %13 {offsets = [0, 256], sizes = [32, 64], strides = [1, 1]} : vector<32x320xf32> to vector<32x64xf32>
    %c0_7 = arith.constant 0 : index
    %c0_8 = arith.constant 0 : index
    %19 = vector.load %arg6[%c0_7, %c0_8] : memref<32x64xf32, #tpu.memory_space<vmem>>, vector<32x64xf32>
    %c0_9 = arith.constant 0 : index
    %c0_10 = arith.constant 0 : index
    %20 = vector.load %arg7[%c0_9, %c0_10] : memref<32x64xf32, #tpu.memory_space<vmem>>, vector<32x64xf32>
    %21 = arith.mulf %14, %19 : vector<32x64xf32>
    %22 = arith.mulf %17, %20 : vector<32x64xf32>
    %23 = arith.addf %21, %22 : vector<32x64xf32>
    %24 = arith.mulf %15, %19 : vector<32x64xf32>
    %25 = arith.mulf %18, %20 : vector<32x64xf32>
    %26 = arith.addf %24, %25 : vector<32x64xf32>
    %27 = vector.shape_cast %23 : vector<32x64xf32> to vector<2x16x64xf32>
    %28 = vector.shape_cast %26 : vector<32x64xf32> to vector<2x16x64xf32>
    %29 = vector.shape_cast %16 : vector<32x64xf32> to vector<2x16x64xf32>
    %c0_11 = arith.constant 0 : index
    %c0_12 = arith.constant 0 : index
    %30 = vector.load %arg8[%c0_11, %c0_12] : memref<64x64xf32, #tpu.memory_space<vmem>>, vector<64x64xf32>
    %31 = tpu.concatenate %27, %27, %27, %27 in 1 : vector<2x16x64xf32>, vector<2x16x64xf32>, vector<2x16x64xf32>, vector<2x16x64xf32> -> vector<2x64x64xf32>
    %32 = vector.shape_cast %30 : vector<64x64xf32> to vector<1x64x64xf32>
    %33 = vector.broadcast %32 : vector<1x64x64xf32> to vector<2x64x64xf32>
    %34 = arith.mulf %31, %33 : vector<2x64x64xf32>
    "tpu.trace_start"() <{level = 10 : i32, message = "bnd,bkd->bnk"}> : () -> ()
    %cst_13 = arith.constant dense<0.000000e+00> : vector<2x64x16xf32>
    %35 = tpu.matmul %34, %28, %cst_13 {dimension_numbers = #tpu.dot_dimension_numbers<[2], [2], [1], [1], [0, 0, 0, 1, 1, 1], [0], [0]>} : vector<2x64x64xf32>, vector<2x16x64xf32>, vector<2x64x16xf32> -> vector<2x64x16xf32>
    "tpu.trace_stop"() : () -> ()
    %cst_14 = arith.constant dense<0xFF800000> : vector<2x64xf32>
    %36 = vector.multi_reduction <maximumf>, %35, %cst_14 [2] : vector<2x64x16xf32> to vector<2x64xf32>
    %37 = vector.shape_cast %36 : vector<2x64xf32> to vector<2x64x1xf32>
    %38 = vector.broadcast %37 : vector<2x64x1xf32> to vector<2x64x16xf32>
    %39 = arith.subf %35, %38 : vector<2x64x16xf32>
    %40 = math.exp %39 : vector<2x64x16xf32>
    %cst_15 = arith.constant dense<0.000000e+00> : vector<2x64xf32>
    %41 = vector.multi_reduction <add>, %40, %cst_15 [2] : vector<2x64x16xf32> to vector<2x64xf32>
    %42 = vector.shape_cast %41 : vector<2x64xf32> to vector<2x64x1xf32>
    %43 = tpu.reciprocal %42 {approx = true} : vector<2x64x1xf32> -> vector<2x64x1xf32>
    %44 = vector.broadcast %43 : vector<2x64x1xf32> to vector<2x64x16xf32>
    %45 = arith.mulf %40, %44 : vector<2x64x16xf32>
    "tpu.trace_start"() <{level = 10 : i32, message = "bnk,bkd->bnd"}> : () -> ()
    %cst_16 = arith.constant dense<0.000000e+00> : vector<2x64x64xf32>
    %46 = tpu.matmul %45, %29, %cst_16 {dimension_numbers = #tpu.dot_dimension_numbers<[2], [1], [1], [2], [0, 0, 0, 1, 1, 2], [0], [0]>} : vector<2x64x16xf32>, vector<2x16x64xf32>, vector<2x64x64xf32> -> vector<2x64x64xf32>
    "tpu.trace_stop"() : () -> ()
    %47 = vector.shape_cast %30 : vector<64x64xf32> to vector<1x64x64xf32>
    %48 = vector.broadcast %47 : vector<1x64x64xf32> to vector<2x64x64xf32>
    %49 = arith.mulf %46, %48 : vector<2x64x64xf32>
    %c0_17 = arith.constant 0 : index
    %c0_18 = arith.constant 0 : index
    %50 = vector.load %arg9[%c0_17, %c0_18] : memref<16x64xf32, #tpu.memory_space<vmem>>, vector<16x64xf32>
    %51 = vector.shape_cast %50 : vector<16x64xf32> to vector<1x16x64xf32>
    %52 = vector.shape_cast %51 : vector<1x16x64xf32> to vector<1x16x64xf32>
    %53 = vector.broadcast %52 : vector<1x16x64xf32> to vector<2x16x64xf32>
    "tpu.trace_start"() <{level = 10 : i32, message = "bsn,bnd->bsd"}> : () -> ()
    %cst_19 = arith.constant dense<0.000000e+00> : vector<2x16x64xf32>
    %54 = tpu.matmul %53, %49, %cst_19 {dimension_numbers = #tpu.dot_dimension_numbers<[2], [1], [1], [2], [0, 0, 0, 1, 1, 2], [0], [0]>} : vector<2x16x64xf32>, vector<2x64x64xf32>, vector<2x16x64xf32> -> vector<2x16x64xf32>
    "tpu.trace_stop"() : () -> ()
    %55 = vector.shape_cast %54 : vector<2x16x64xf32> to vector<32x64xf32>
    %c0_20 = arith.constant 0 : index
    %c0_21 = arith.constant 0 : index
    %56 = vector.load %arg3[%c0_20, %c0_21] : memref<64x64xf32, #tpu.memory_space<vmem>>, vector<64x64xf32>
    %cst_22 = arith.constant dense<0.000000e+00> : vector<32x64xf32>
    %57 = tpu.matmul %55, %56, %cst_22 {dimension_numbers = #tpu.dot_dimension_numbers<[1], [0], [0], [1], [0, 0, 1, 1], [], []>} : vector<32x64xf32>, vector<64x64xf32>, vector<32x64xf32> -> vector<32x64xf32>
    %58 = arith.addf %1, %57 : vector<32x64xf32>
    %59 = arith.mulf %58, %58 : vector<32x64xf32>
    %cst_23 = arith.constant dense<0.000000e+00> : vector<32xf32>
    %60 = vector.multi_reduction <add>, %59, %cst_23 [1] : vector<32x64xf32> to vector<32xf32>
    %61 = vector.shape_cast %60 : vector<32xf32> to vector<32x1xf32>
    %cst_24 = arith.constant 6.400000e+01 : f32
    %62 = vector.broadcast %cst_24 : f32 to vector<32x1xf32>
    %63 = arith.divf %61, %62 : vector<32x1xf32>
    %cst_25 = arith.constant 9.99999974E-6 : f32
    %64 = vector.broadcast %cst_25 : f32 to vector<32x1xf32>
    %65 = arith.addf %63, %64 : vector<32x1xf32>
    %66 = math.rsqrt %65 : vector<32x1xf32>
    %67 = vector.broadcast %66 : vector<32x1xf32> to vector<32x64xf32>
    %68 = arith.mulf %58, %67 : vector<32x64xf32>
    %c0_26 = arith.constant 0 : index
    %c0_27 = arith.constant 0 : index
    %69 = vector.load %arg4[%c0_26, %c0_27] : memref<64x512xf32, #tpu.memory_space<vmem>>, vector<64x512xf32>
    %cst_28 = arith.constant dense<0.000000e+00> : vector<32x512xf32>
    %70 = tpu.matmul %68, %69, %cst_28 {dimension_numbers = #tpu.dot_dimension_numbers<[1], [0], [0], [1], [0, 0, 1, 1], [], []>} : vector<32x64xf32>, vector<64x512xf32>, vector<32x512xf32> -> vector<32x512xf32>
    %71 = vector.extract_strided_slice %70 {offsets = [0, 0], sizes = [32, 256], strides = [1, 1]} : vector<32x512xf32> to vector<32x256xf32>
    %72 = vector.extract_strided_slice %70 {offsets = [0, 256], sizes = [32, 256], strides = [1, 1]} : vector<32x512xf32> to vector<32x256xf32>
    %73 = arith.negf %71 : vector<32x256xf32>
    %74 = math.exp %73 : vector<32x256xf32>
    %cst_29 = arith.constant 1.000000e+00 : f32
    %75 = vector.broadcast %cst_29 : f32 to vector<32x256xf32>
    %76 = arith.addf %75, %74 : vector<32x256xf32>
    %77 = arith.divf %75, %76 : vector<32x256xf32>
    %78 = arith.mulf %71, %77 : vector<32x256xf32>
    %79 = arith.mulf %78, %72 : vector<32x256xf32>
    %c0_30 = arith.constant 0 : index
    %c0_31 = arith.constant 0 : index
    %80 = vector.load %arg5[%c0_30, %c0_31] : memref<256x64xf32, #tpu.memory_space<vmem>>, vector<256x64xf32>
    %cst_32 = arith.constant dense<0.000000e+00> : vector<32x64xf32>
    %81 = tpu.matmul %79, %80, %cst_32 {dimension_numbers = #tpu.dot_dimension_numbers<[1], [0], [0], [1], [0, 0, 1, 1], [], []>} : vector<32x256xf32>, vector<256x64xf32>, vector<32x64xf32> -> vector<32x64xf32>
    %82 = arith.addf %58, %81 : vector<32x64xf32>
    %83 = vector.shape_cast %82 : vector<32x64xf32> to vector<2x16x64xf32>
    %c0_33 = arith.constant 0 : index
    %c0_34 = arith.constant 0 : index
    %c0_35 = arith.constant 0 : index
    %84 = vector.load %arg10[%c0_33, %c0_34, %c0_35] : memref<2x16x64xf32, #tpu.memory_space<vmem>>, vector<2x16x64xf32>
    tpu.vector_store %arg10[%c0_33, %c0_34, %c0_35], %83 {strides = array<i32>} : memref<2x16x64xf32, #tpu.memory_space<vmem>>, vector<2x16x64xf32>,
    return
  }
  func.func @transform_0(%arg0: i32) -> (i32, i32, i32) {
    %c0_i32 = arith.constant 0 : i32
    %c0_i32_0 = arith.constant 0 : i32
    %c0_i32_1 = arith.constant 0 : i32
    return %arg0, %c0_i32, %c0_i32_0 : i32, i32, i32
  }
  func.func @transform_1(%arg0: i32) -> (i32, i32) {
    %c0_i32 = arith.constant 0 : i32
    %c0_i32_0 = arith.constant 0 : i32
    %c0_i32_1 = arith.constant 0 : i32
    return %c0_i32, %c0_i32_0 : i32, i32
  }
  func.func @transform_2(%arg0: i32) -> (i32, i32) {
    %c0_i32 = arith.constant 0 : i32
    %c0_i32_0 = arith.constant 0 : i32
    %c0_i32_1 = arith.constant 0 : i32
    return %c0_i32, %c0_i32_0 : i32, i32
  }
  func.func @transform_3(%arg0: i32) -> (i32, i32) {
    %c0_i32 = arith.constant 0 : i32
    %c0_i32_0 = arith.constant 0 : i32
    %c0_i32_1 = arith.constant 0 : i32
    return %c0_i32, %c0_i32_0 : i32, i32
  }
  func.func @transform_4(%arg0: i32) -> (i32, i32) {
    %c0_i32 = arith.constant 0 : i32
    %c0_i32_0 = arith.constant 0 : i32
    %c0_i32_1 = arith.constant 0 : i32
    return %c0_i32, %c0_i32_0 : i32, i32
  }
  func.func @transform_5(%arg0: i32) -> (i32, i32) {
    %c0_i32 = arith.constant 0 : i32
    %c0_i32_0 = arith.constant 0 : i32
    %c0_i32_1 = arith.constant 0 : i32
    return %c0_i32, %c0_i32_0 : i32, i32
  }
  func.func @transform_6(%arg0: i32) -> (i32, i32) {
    %c0_i32 = arith.constant 0 : i32
    %c0_i32_0 = arith.constant 0 : i32
    %c0_i32_1 = arith.constant 0 : i32
    return %c0_i32, %c0_i32_0 : i32, i32
  }
  func.func @transform_7(%arg0: i32) -> (i32, i32) {
    %c0_i32 = arith.constant 0 : i32
    %c0_i32_0 = arith.constant 0 : i32
    %c0_i32_1 = arith.constant 0 : i32
    return %c0_i32, %c0_i32_0 : i32, i32
  }
  func.func @transform_8(%arg0: i32) -> (i32, i32) {
    %c0_i32 = arith.constant 0 : i32
    %c0_i32_0 = arith.constant 0 : i32
    %c0_i32_1 = arith.constant 0 : i32
    return %c0_i32, %c0_i32_0 : i32, i32
  }
  func.func @transform_9(%arg0: i32) -> (i32, i32, i32) {
    %c0_i32 = arith.constant 0 : i32
    %c0_i32_0 = arith.constant 0 : i32
    %c0_i32_1 = arith.constant 0 : i32
    return %arg0, %c0_i32, %c0_i32_0 : i32, i32, i32
  }
}

</mosaic_0001>

<bundles_post_ra>
// kernel: tpu_custom_call.1
= control target key start
LH: loop header
LB: loop body
LE: loop exit
PB: predicated region body
PF: predicated region fallthrough
CT: control target
= control target key end

     0   :  { %14 = vsyncpa [#allocation3], 0  ;;  %s2693_s0 = inlined_call_operand.hbm [shape: f32[2,16,64], index: 0, kind: input, shape index: {}]   ;;  %s2694_s1 = inlined_call_operand.hbm [shape: f32[64,320], index: 1, kind: input, shape index: {}]   ;;  %s2695_s2 = inlined_call_operand.vmem [shape: f32[64,64], index: 2, kind: input, shape index: {}]   ;;  %s2696_s3 = inlined_call_operand.vmem [shape: f32[64,512], index: 3, kind: input, shape index: {}]   ;;  %s2697_s4 = inlined_call_operand.vmem [shape: f32[256,64], index: 4, kind: input, shape index: {}]   ;;  %s2698_s5 = inlined_call_operand.hbm [shape: f32[32,64], index: 5, kind: input, shape index: {}]   ;;  %s2699_s6 = inlined_call_operand.hbm [shape: f32[32,64], index: 6, kind: input, shape index: {}]   ;;  %s2700_s7 = inlined_call_operand.vmem [shape: f32[64,64], index: 7, kind: input, shape index: {}]   ;;  %s2701_s8 = inlined_call_operand.hbm [shape: f32[16,64], index: 8, kind: input, shape index: {}]   ;;  %s2702_s9 = inlined_call_operand.hbm [shape: f32[2,16,64], index: 9, kind: output, shape index: {}]  }
   0x1   :  { %15 = vsyncpa [#allocation6], 0 }
   0x2   :  { %16 = vsyncpa [#allocation9], 0  ;;  %s35_s11 = sshll.u32 %s2694_s1, 4  ;;  %s36_s11 = int_to_ptr.hbm [resolvable:$true] %s35_s11 }
   0x3   :  { %17 = vsyncpa [#allocation4], 0  ;;  %s1907_s12 = smov [#allocation5]   ;;  %s1908_s14 = smov 384  }
   0x4   :  { %s37_s13 = sshll.u32 %s1907_s12, 4  ;;  %s1909_s15 = smov 24   ;;  %s38_s13 = int_to_ptr.vmem [resolvable:$true] %s37_s13 }
   0x5   :  { %43 = dma.hbm_to_vmem [thread:$0]  %s36_s11, 3072, %s38_s13, [#allocation6], %s1908_s14, %s1908_s14, %s1909_s15  }
   0x6   :  { %s67_s18 = sshll.u32 %s2699_s6, 4  ;;  %s1910_s19 = smov [#allocation8]   ;;  %s68_s18 = int_to_ptr.hbm [resolvable:$true] %s67_s18 }
   0x7   :  { %s69_s20 = sshll.u32 %s1910_s19, 4  ;;  %s22_s23 = sshll.u32 %s2693_s0, 4  ;;  %s70_s20 = int_to_ptr.vmem [resolvable:$true] %s69_s20  ;;  %s23_s23 = int_to_ptr.hbm [resolvable:$true] %s22_s23 }
   0x8   :  { %s1911_s1 = smov 128   ;;  %s1912_s24 = smov 8  }
   0x9   :  { %75 = dma.hbm_to_vmem [thread:$0]  %s68_s18, 512, %s70_s20, [#allocation9], %s1911_s1, %s1911_s1, %s1912_s24  }
   0xa   :  { %s54_s27 = sshll.u32 %s2698_s5, 4  ;;  %s1913_s6 = smov [#allocation2]   ;;  %s55_s27 = int_to_ptr.hbm [resolvable:$true] %s54_s27 }
   0xb   :  { %s24_s28 = sshll.u32 %s1913_s6, 4  ;;  %s1914_s0 = smov [#allocation7]   ;;  %s25_s28 = int_to_ptr.vmem [resolvable:$true] %s24_s28 }
   0xc   :  { %30 = dma.hbm_to_vmem [thread:$0]  %s23_s23, 512, %s25_s28, [#allocation3], %s1911_s1, %s1911_s1, %s1912_s24  }
   0xd   :  { %s56_s29 = sshll.u32 %s1914_s0, 4  ;;  %s82_s11 = sshll.u32 %s2701_s8, 4  ;;  %s57_s29 = int_to_ptr.vmem [resolvable:$true] %s56_s29  ;;  %s83_s11 = int_to_ptr.hbm [resolvable:$true] %s82_s11 }
   0xe   :  { %62 = dma.hbm_to_vmem [thread:$0]  %s55_s27, 512, %s57_s29, [#allocation6], %s1911_s1, %s1911_s1, %s1912_s24  }
   0xf   :  { %s1915_s5 = smov [#allocation10]  }
  0x10   :  { %s84_s12 = sshll.u32 %s1915_s5, 4  ;;  %s85_s12 = int_to_ptr.vmem [resolvable:$true] %s84_s12 }
  0x11   :  { %90 = dma.hbm_to_vmem [thread:$0]  %s83_s11, 256, %s85_s12, [#allocation9], %s1911_s1, %s1911_s1, %s1912_s24  }
  0x12   :  { %1899 = dma.done.wait [#allocation3], 512  }
  0x13   :  { %1900 = vsyncadd [#allocation3], 4294966784 }
  0x14   :  { %1901 = dma.done.wait [#allocation6], 3584  }
  0x15   :  { %1902 = vsyncadd [#allocation6], 4294963712 }
  0x16   :  { %1903 = dma.done.wait [#allocation9], 768  }
  0x17   :  { %1904 = vsyncadd [#allocation9], 4294966528  ;;  %v1996_v0 = vld [vmem:[#allocation2 + $0x18] sm:$0xff]  ;;  %vm119_vm0 = vcmask 523264   ;;  %v1998_v1 = vld [vmem:[#allocation2 + $0x8] sm:$0xff]  ;;  %v1916_v12 = vmov 64.0  }
  0x18   :  { %v118_v2 = vmul.f32 %v1996_v0, %v1996_v0  ;;  %v116_v3 = vmul.f32 %v1998_v1, %v1998_v1  ;;  %v2004_v4 = vld [vmem:[#allocation2 + $0x10] sm:$0xff]  ;;  %v2006_v5 = vld [vmem:[#allocation2] sm:$0xff]  ;;  %1637 = vrcp.f32 %v1916_v12  ;;  %v212_v13 = vld [vmem:[#allocation5 + $0xa8] sm:$0xff]  ;;  %s1917_s8 = smov 64   ;;  %vm584_vm14 = vcmask 130048   ;;  %s1514_s18 = sshll.u32 %s2702_s9, 4  ;;  %s1515_s18 = int_to_ptr.hbm [resolvable:$true] %s1514_s18 }
  0x19   :  { %v117_v8 = vmul.f32 %v2004_v4, %v2004_v4  ;;  %v115_v9 = vmul.f32 %v2006_v5, %v2006_v5  ;;  %v213_v14 = vld [vmem:[#allocation5 + $0xb0] sm:$0xff]  ;;  %1609 = vmatpush.msra.mxu2 %v212_v13  ;;  %235 = vmatpush.msra.mxu0 %v212_v13  ;;  %v210_v17 = vld [vmem:[#allocation5 + $0x98] sm:$0xff]  ;;  %v207_v20 = vld [vmem:[#allocation5 + $0x80] sm:$0xff] }
  0x1a   :  { %v129_v6 = vsel %vm119_vm0, %v118_v2, 0.0  ;;  %v123_v7 = vsel %vm119_vm0, %v116_v3, 0.0  ;;  %1617 = vmatpush.msra.mxu1 %v213_v14  ;;  %v209_v16 = vld [vmem:[#allocation5 + $0x90] sm:$0xff]  ;;  %v206_v19 = vld [vmem:[#allocation5 + $0x78] sm:$0xff]  ;;  %v203_v21 = vld [vmem:[#allocation5 + $0x60] sm:$0xff] }
  0x1b   :  { %130 = vadd.xlane.f32.xlu1 %v129_v6  ;;  %124 = vadd.xlane.f32.xlu0 %v123_v7  ;;  %v126_v10 = vsel %vm119_vm0, %v117_v8, 0.0  ;;  %v120_v11 = vsel %vm119_vm0, %v115_v9, 0.0  ;;  %v204_v22 = vld [vmem:[#allocation5 + $0x68] sm:$0xff]  ;;  %v201_v25 = vld [vmem:[#allocation5 + $0x50] sm:$0xff]  ;;  %v198_v27 = vld [vmem:[#allocation5 + $0x38] sm:$0xff] }
  0x1c   :  { %1610 = vmatpush.msra.mxu2 %v209_v16  ;;  %1618 = vmatpush.msra.mxu1 %v210_v17  ;;  %v200_v24 = vld [vmem:[#allocation5 + $0x48] sm:$0xff]  ;;  %v197_v26 = vld [vmem:[#allocation5 + $0x30] sm:$0xff]  ;;  %v194_v29 = vld [vmem:[#allocation5 + $0x18] sm:$0xff] }
  0x1d   :  { %236 = vmatpush.msra.mxu0 %v209_v16  ;;  %v195_v30 = vld [vmem:[#allocation5 + $0x20] sm:$0xff]  ;;  %v192_v32 = vld [vmem:[#allocation5 + $0x8] sm:$0xff]  ;;  %v214_v40 = vld [vmem:[#allocation5 + $0xb8] sm:$0xff] }
  0x1e   :  { %v1638_v15 = vpop.eup %1637  ;;  %1611 = vmatpush.msra.mxu2 %v206_v19  ;;  %1619 = vmatpush.msra.mxu1 %v207_v20  ;;  %v191_v31 = vld [vmem:[#allocation5] sm:$0xff]  ;;  %v208_v44 = vld [vmem:[#allocation5 + $0x88] sm:$0xff]  ;;  %v205_v45 = vld [vmem:[#allocation5 + $0x70] sm:$0xff] }
  0x1f   :  { %v133_v18 = vmul.f32 64.0, %v1638_v15  ;;  %237 = vmatpush.msra.mxu0 %v206_v19  ;;  %vm137_vm1 = vweird.f32 %v1638_v15  ;;  %v211_v41 = vld [vmem:[#allocation5 + $0xa0] sm:$0xff]  ;;  %v202_v52 = vld [vmem:[#allocation5 + $0x58] sm:$0xff]  ;;  %v2029_v55 = vld [vmem:[#allocation8 + $0x10] sm:$0xff] }
  0x20   :  { %1612 = vmatpush.msra.mxu2 %v203_v21  ;;  %1620 = vmatpush.msra.mxu1 %v204_v22  ;;  %v2022_v43 = vld [vmem:[#allocation8] sm:$0xff]  ;;  %v196_v58 = vld [vmem:[#allocation5 + $0x28] sm:$0xff]  ;;  %v193_v61 = vld [vmem:[#allocation5 + $0x10] sm:$0xff] }
  0x21   :  { %v134_v23 = vsub.f32 1.0, %v133_v18  ;;  %238 = vmatpush.msra.mxu0 %v203_v21  ;;  %v199_v53 = vld [vmem:[#allocation5 + $0x40] sm:$0xff] }
  0x22   :  { %1613 = vmatpush.msra.mxu2 %v200_v24  ;;  %1621 = vmatpush.msra.mxu1 %v201_v25  ;;  %v2031_v56 = vld [vmem:[#allocation7] sm:$0xff] }
  0x23   :  { %127 = vadd.xlane.f32.xlu0 %v126_v10  ;;  %121 = vadd.xlane.f32.xlu1 %v120_v11  ;;  %v135_v28 = vmul.f32 %v1638_v15, %v134_v23 }
  0x24   :  { %239 = vmatpush.msra.mxu0 %v200_v24  ;;  %1614 = vmatpush.msra.mxu2 %v197_v26 }
  0x25   :  { %1622 = vmatpush.msra.mxu1 %v198_v27  ;;  %v136_v33 = vadd.f32 %v1638_v15, %v135_v28 }
  0x26   :  { %240 = vmatpush.msra.mxu0 %v197_v26  ;;  %1615 = vmatpush.msra.mxu2 %v194_v29 }
  0x27   :  { %1623 = vmatpush.msra.mxu1 %v195_v30  ;;  %v2016_v34 = vsel %vm137_vm1, %v1638_v15, %v136_v33 }
  0x28   :  { %241 = vmatpush.msra.mxu0 %v194_v29  ;;  %1616 = vmatpush.msra.mxu2 %v191_v31 }
  0x29   :  { %1624 = vmatpush.msra.mxu1 %v192_v32 }
  0x2a   :  { %242 = vmatpush.msra.mxu0 %v191_v31  ;;  %293 = vmatpush.msrb.mxu2 %v214_v40 }
  0x2c   :  { %264 = vmatpush.msrb.mxu0 %v213_v14  ;;  %294 = vmatpush.msrb.mxu2 %v211_v41 }
  0x2e   :  { %265 = vmatpush.msrb.mxu0 %v210_v17  ;;  %295 = vmatpush.msrb.mxu2 %v208_v44 }
  0x30   :  { %266 = vmatpush.msrb.mxu0 %v207_v20  ;;  %296 = vmatpush.msrb.mxu2 %v205_v45 }
  0x32   :  { %267 = vmatpush.msrb.mxu0 %v204_v22  ;;  %297 = vmatpush.msrb.mxu2 %v202_v52 }
  0x34   :  { %268 = vmatpush.msrb.mxu0 %v201_v25  ;;  %298 = vmatpush.msrb.mxu2 %v199_v53 }
  0x36   :  { %269 = vmatpush.msrb.mxu0 %v198_v27  ;;  %299 = vmatpush.msrb.mxu2 %v196_v58  ;;  %v2046_v27 = vld [vmem:[#allocation7 + $0x8] sm:$0xff] }
  0x37   :  { %370 = vrot.lane.b32.xlu0 %v2031_v56, %s1917_s8  ;;  %372 = vrot.lane.b32.xlu2 %v2046_v27, %s1917_s8 }
  0x38   :  { %270 = vmatpush.msrb.mxu0 %v195_v30  ;;  %300 = vmatpush.msrb.mxu2 %v193_v61 }
  0x3a   :  { %271 = vmatpush.msrb.mxu0 %v192_v32 }
  0x3c   :  { %330 = vrot.lane.b32.xlu1 %v2022_v43, %s1917_s8 }
  0x44   :  { %334 = vrot.lane.b32.xlu1 %v2029_v55, %s1917_s8 }
  0x8e   :  { %v131_v35 = vpop.xlane.xlu1 %130  ;;  %v125_v36 = vpop.xlane.xlu0 %124 }
  0x8f   :  { %v142_v37 = vmul.f32 %v2016_v34, %v131_v35  ;;  %v140_v38 = vmul.f32 %v2016_v34, %v125_v36 }
  0x91   :  { %v144_v39 = vadd.f32 1e-05, %v140_v38  ;;  %v2020_v42 = vadd.f32 1e-05, %v142_v37  ;;  %v319_v38 = vld [vmem:[#allocation8 + $0x8] sm:$0xff] }
  0x93   :  { %1639 = vrsqrt.f32 %v144_v39  ;;  %vm163_vm3 = vweird.f32 %v144_v39  ;;  %vm183_vm11 = vweird.f32 %v2020_v42 }
  0x94   :  { %1641 = vrsqrt.f32 %v2020_v42 }
  0x96   :  { %v128_v46 = vpop.xlane.xlu0 %127  ;;  %v122_v47 = vpop.xlane.xlu1 %121 }
  0x97   :  { %v141_v48 = vmul.f32 %v2016_v34, %v128_v46  ;;  %v139_v49 = vmul.f32 %v2016_v34, %v122_v47  ;;  %v2069_v46 = vld [vmem:[#allocation7 + $0x18] sm:$0xff]  ;;  %v2075_v47 = vld [vmem:[#allocation7 + $0x10] sm:$0xff] }
  0x99   :  { %v145_v50 = vadd.f32 1e-05, %v141_v48  ;;  %v143_v51 = vadd.f32 1e-05, %v139_v49  ;;  %v1640_v54 = vpop.eup %1639 }
  0x9a   :  { %v158_v57 = vmul.f32 %v1640_v54, %v144_v39  ;;  %v1642_v59 = vpop.eup %1641  ;;  %vm164_vm2 = vweird.f32 %v1640_v54 }
  0x9b   :  { %1643 = vrsqrt.f32 %v145_v50  ;;  %v178_v62 = vmul.f32 %v1642_v59, %v2020_v42  ;;  %vm165_vm4 = vmor %vm163_vm3, %vm164_vm2  ;;  %vm153_vm5 = vweird.f32 %v143_v51  ;;  %vm173_vm8 = vweird.f32 %v145_v50  ;;  %v321_v42 = vld [vmem:[#allocation8 + $0x18] sm:$0xff] }
  0x9c   :  { %1645 = vrsqrt.f32 %v143_v51  ;;  %v159_v60 = vmul.f32 %v1640_v54, %v158_v57  ;;  %vm184_vm12 = vweird.f32 %v1642_v59 }
  0x9d   :  { %v179_v8 = vmul.f32 %v1642_v59, %v178_v62  ;;  %vm185_vm13 = vmor %vm183_vm11, %vm184_vm12 }
  0x9e   :  { %v160_v63 = vmul.f32 0.5, %v159_v60 }
  0x9f   :  { %v180_v16 = vmul.f32 0.5, %v179_v8 }
  0xa0   :  { %v161_v3 = vsub.f32 1.5, %v160_v63 }
  0xa1   :  { %v1644_v2 = vpop.eup %1643  ;;  %v181_v21 = vsub.f32 1.5, %v180_v16 }
  0xa2   :  { %v1646_v6 = vpop.eup %1645  ;;  %v168_v7 = vmul.f32 %v1644_v2, %v145_v50  ;;  %v162_v10 = vmul.f32 %v1640_v54, %v161_v3  ;;  %vm174_vm7 = vweird.f32 %v1644_v2  ;;  %v373_v50 = vpop.permute.xlu2 %372 }
  0xa3   :  { %v148_v9 = vmul.f32 %v1646_v6, %v143_v51  ;;  %vm154_vm6 = vweird.f32 %v1646_v6  ;;  %vm175_vm10 = vmor %vm173_vm8, %vm174_vm7  ;;  %v182_v26 = vmul.f32 %v1642_v59, %v181_v21 }
  0xa4   :  { %v169_v11 = vmul.f32 %v1644_v2, %v168_v7  ;;  %v166_v13 = vsel %vm165_vm4, %v1640_v54, %v162_v10  ;;  %vm155_vm9 = vmor %vm153_vm5, %vm154_vm6 }
  0xa5   :  { %v149_v12 = vmul.f32 %v1646_v6, %v148_v9  ;;  %v188_v15 = vmul.f32 %v166_v13, %v1998_v1  ;;  %v186_v28 = vsel %vm185_vm13, %v1642_v59, %v182_v26 }
  0xa6   :  { %v170_v14 = vmul.f32 0.5, %v169_v11  ;;  %v190_v29 = vmul.f32 %v186_v28, %v1996_v0 }
  0xa7   :  { %v150_v17 = vmul.f32 0.5, %v149_v12  ;;  %1530 = vmatmul.msk.f32.vlgmr.msra.gmra.mxu2 %vm119_vm0, %v188_v15  ;;  %1534 = vmatmul.msk.f32.vlgmr.msra.gmra.mxu1 %vm119_vm0, %v188_v15 }
  0xa8   :  { %v171_v18 = vsub.f32 1.5, %v170_v14 }
  0xa9   :  { %v151_v19 = vsub.f32 1.5, %v150_v17  ;;  %v371_v51 = vpop.permute.xlu0 %370  ;;  %v2097_v17 = vld [vmem:[%s2700_s7] sm:$0xff] }
  0xaa   :  { %v172_v20 = vmul.f32 %v1644_v2, %v171_v18 }
  0xab   :  { %v152_v22 = vmul.f32 %v1646_v6, %v151_v19 }
  0xac   :  { %v176_v23 = vsel %vm175_vm10, %v1644_v2, %v172_v20 }
  0xad   :  { %v156_v1 = vsel %vm155_vm9, %v1646_v6, %v152_v22  ;;  %v189_v24 = vmul.f32 %v176_v23, %v2004_v4  ;;  %v2107_v22 = vld [vmem:[%s2700_s7 + $0x8] sm:$0xff] }
  0xae   :  { %v187_v25 = vmul.f32 %v156_v1, %v2006_v5  ;;  %v331_v48 = vpop.permute.xlu1 %330  ;;  %v2114_v1 = vld [vmem:[%s2700_s7 + $0x10] sm:$0xff] }
  0xaf   :  { %1531 = vmatmul.msk.f32.gmra.mxu2 %vm119_vm0, %v189_v24  ;;  %1535 = vmatmul.msk.f32.gmra.mxu1 %vm119_vm0, %v189_v24 }
  0xb0   :  { %1529 = vmatmul.msk.f32.vlgmr.msra.gmra.mxu0 %vm119_vm0, %v187_v25 }
  0xb7   :  { %1532 = vmatmul.msk.f32.gmra.mxu2 %vm119_vm0, %v190_v29  ;;  %1536 = vmatmul.msk.f32.gmra.mxu1 %vm119_vm0, %v190_v29 }
  0xb8   :  { %1533 = vmatmul.msk.f32.vlgmr.msrb.gmra.mxu0 %vm119_vm0, %v187_v25 }
  0xbf   :  { %1537 = vmatmul.msk.f32.vlgmr.msrb.gmra.mxu2 %vm119_vm0, %v187_v25  ;;  %v2121_v25 = vld [vmem:[%s2700_s7 + $0x18] sm:$0xff] }
  0xc7   :  { %1538 = vmatmul.msk.f32.gmra.mxu2 %vm119_vm0, %v188_v15 }
  0xcf   :  { %1539 = vmatmul.msk.f32.gmra.mxu2 %vm119_vm0, %v189_v24 }
  0xd7   :  { %1540 = vmatmul.msk.f32.gmra.mxu2 %vm119_vm0, %v190_v29 }
 0x124   :  { %v276_v4 = vpop.f32.mrf.mxu1 }
 0x125   :  { %799 = vmatpush.msrb.mxu1 %v276_v4 }
 0x12a   :  { %v2059_v5 = vpop.f32.mrf.mxu2 }
 0x12b   :  { %v383_v57 = vmul.f32 %v373_v50, %v2059_v5  ;;  %v323_v20 = vmul.f32 %v2046_v27, %v2059_v5  ;;  %v2128_v27 = vld [vmem:[%s2700_s7 + $0x20] sm:$0xff]  ;;  %v2136_v5 = vld [vmem:[%s2700_s7 + $0x28] sm:$0xff] }
 0x12c   :  { %v279_v0 = vpop.f32.mrf.mxu1 }
 0x12d   :  { %v244_v30 = vpop.f32.mrf.mxu0 }
 0x12e   :  { %v382_v52 = vmul.f32 %v371_v51, %v244_v30  ;;  %v322_v14 = vmul.f32 %v2031_v56, %v244_v30 }
 0x132   :  { %v2061_v31 = vpop.f32.mrf.mxu2 }
 0x133   :  { %v324_v30 = vmul.f32 %v2075_v47, %v2061_v31 }
 0x134   :  { %v282_v33 = vpop.f32.mrf.mxu1 }
 0x135   :  { %v273_v32 = vpop.f32.mrf.mxu0  ;;  %864 = vmatpush.msra.mxu2 %v282_v33 }
 0x136   :  { %800 = vmatpush.msrb.mxu1 %v273_v32  ;;  %v342_v49 = vmul.f32 %v331_v48, %v273_v32 }
 0x137   :  { %865 = vmatpush.msra.mxu2 %v279_v0 }
 0x13a   :  { %v2063_v35 = vpop.f32.mrf.mxu2 }
 0x142   :  { %v302_v36 = vpop.f32.mrf.mxu2 }
 0x143   :  { %v386_v37 = vmul.f32 %v2022_v43, %v302_v36 }
 0x145   :  { %394 = vrot.lane.b32.xlu2 %v386_v37, %s1917_s8 }
 0x14a   :  { %v305_v39 = vpop.f32.mrf.mxu2 }
 0x14b   :  { %v387_v40 = vmul.f32 %v319_v38, %v305_v39  ;;  %v325_v39 = vmul.f32 %v2069_v46, %v2063_v35 }
 0x14d   :  { %396 = vrot.lane.b32.xlu2 %v387_v40, %s1917_s8 }
 0x152   :  { %v308_v41 = vpop.f32.mrf.mxu2 }
 0x153   :  { %v388_v43 = vmul.f32 %v2029_v55, %v308_v41  ;;  %v335_v55 = vpop.permute.xlu1 %334 }
 0x154   :  { %v344_v59 = vmul.f32 %v335_v55, %v279_v0 }
 0x155   :  { %332 = vrot.lane.b32.xlu2 %v319_v38, %s1917_s8  ;;  %v2147_v38 = vld [vmem:[%s2700_s7 + $0x30] sm:$0xff] }
 0x15a   :  { %v311_v44 = vpop.f32.mrf.mxu2 }
 0x15b   :  { %v389_v45 = vmul.f32 %v321_v42, %v311_v44 }
 0x15d   :  { %376 = vrot.lane.b32.xlu2 %v2069_v46, %s1917_s8  ;;  %400 = vrot.lane.b32.xlu0 %v389_v45, %s1917_s8 }
 0x165   :  { %374 = vrot.lane.b32.xlu2 %v2075_v47, %s1917_s8  ;;  %398 = vrot.lane.b32.xlu0 %v388_v43, %s1917_s8 }
 0x16d   :  { %336 = vrot.lane.b32.xlu2 %v321_v42, %s1917_s8  ;;  %350 = vrot.lane.b32.xlu0 %v342_v49, %s1917_s8  ;;  %v2158_v42 = vld [vmem:[%s2700_s7 + $0x38] sm:$0xff] }
 0x19f   :  { %v395_v53 = vpop.permute.xlu2 %394 }
 0x1a0   :  { %v406_v54 = vadd.f32 %v395_v53, %v382_v52 }
 0x1a2   :  { %436 = vrot.lane.b32.xlu2 %v406_v54, %s1917_s8 }
 0x1a7   :  { %v397_v58 = vpop.permute.xlu2 %396 }
 0x1a8   :  { %v407_v60 = vadd.f32 %v397_v58, %v383_v57 }
 0x1aa   :  { %438 = vrot.lane.b32.xlu1 %v407_v60, %s1917_s8  ;;  %354 = vrot.lane.b32.xlu2 %v344_v59, %s1917_s8 }
 0x1af   :  { %v333_v61 = vpop.permute.xlu2 %332 }
 0x1b0   :  { %v343_v62 = vmul.f32 %v333_v61, %v276_v4 }
 0x1b2   :  { %352 = vrot.lane.b32.xlu1 %v343_v62, %s1917_s8 }
 0x1b7   :  { %v377_v63 = vpop.permute.xlu2 %376 }
 0x1b8   :  { %v385_v3 = vmul.f32 %v377_v63, %v2063_v35 }
 0x1bf   :  { %v375_v2 = vpop.permute.xlu2 %374 }
 0x1c0   :  { %v384_v9 = vmul.f32 %v375_v2, %v2061_v31 }
 0x1c7   :  { %v337_v8 = vpop.permute.xlu2 %336 }
 0x1c8   :  { %v345_v11 = vmul.f32 %v337_v8, %v282_v33 }
 0x1cf   :  { %v401_v6 = vpop.permute.xlu0 %400 }
 0x1d0   :  { %v409_v7 = vadd.f32 %v401_v6, %v385_v3 }
 0x1d2   :  { %513 = vrot.lane.b32.xlu0 %v409_v7, %s1917_s8 }
 0x1d7   :  { %v399_v10 = vpop.permute.xlu0 %398 }
 0x1d8   :  { %v408_v12 = vadd.f32 %v399_v10, %v384_v9 }
 0x1da   :  { %511 = vrot.lane.b32.xlu1 %v408_v12, %s1917_s8  ;;  %356 = vrot.lane.b32.xlu0 %v345_v11, %s1917_s8 }
 0x1df   :  { %v351_v13 = vpop.permute.xlu0 %350 }
 0x1e0   :  { %v362_v16 = vadd.f32 %v351_v13, %v322_v14 }
 0x1e2   :  { %v418_v19 = vmul.f32 %v2097_v17, %v362_v16  ;;  %v420_v24 = vmul.f32 %v2114_v1, %v362_v16  ;;  %v422_v28 = vmul.f32 %v2128_v27, %v362_v16  ;;  %v424_v40 = vmul.f32 %v2147_v38, %v362_v16 }
 0x1fc   :  { %v437_v18 = vpop.permute.xlu2 %436 }
 0x204   :  { %v355_v4 = vpop.permute.xlu2 %354 }
 0x205   :  { %v364_v0 = vadd.f32 %v355_v4, %v324_v30 }
 0x207   :  { %v426_v36 = vmul.f32 %v2097_v17, %v364_v0  ;;  %v428_v35 = vmul.f32 %v2114_v1, %v364_v0  ;;  %v430_v46 = vmul.f32 %v2128_v27, %v364_v0  ;;  %v432_v47 = vmul.f32 %v2147_v38, %v364_v0 }
 0x21c   :  { %v439_v15 = vpop.permute.xlu1 %438 }
 0x21d   :  { %1541 = vmatpush.xpose.msk.msra.mxu3 %vm119_vm0, %v439_v15 }
 0x221   :  { %1542 = vmatpush.xpose.msk.msra.mxu3 %vm119_vm0, %v437_v18 }
 0x224   :  { %1543 = vmatmul.msk.f32.vlgmr.msra.gmra.mxu3 %vm119_vm0, %v418_v19  ;;  %v353_v56 = vpop.permute.xlu1 %352 }
 0x225   :  { %v363_v21 = vadd.f32 %v353_v56, %v323_v20 }
 0x227   :  { %v419_v23 = vmul.f32 %v2107_v22, %v363_v21  ;;  %v421_v26 = vmul.f32 %v2121_v25, %v363_v21  ;;  %v423_v32 = vmul.f32 %v2136_v5, %v363_v21  ;;  %v425_v44 = vmul.f32 %v2158_v42, %v363_v21 }
 0x22c   :  { %1544 = vmatmul.msk.f32.gmra.mxu3 %vm119_vm0, %v419_v23 }
 0x234   :  { %1545 = vmatmul.msk.f32.gmra.mxu3 %vm119_vm0, %v420_v24 }
 0x23c   :  { %1546 = vmatmul.msk.f32.gmra.mxu3 %vm119_vm0, %v421_v26 }
 0x244   :  { %v514_v29 = vpop.permute.xlu0 %513  ;;  %1547 = vmatmul.msk.f32.gmra.mxu3 %vm119_vm0, %v422_v28 }
 0x245   :  { %1551 = vmatpush.xpose.msk.msra.mxu0 %vm119_vm0, %v514_v29 }
 0x24c   :  { %1548 = vmatmul.msk.f32.gmra.mxu3 %vm119_vm0, %v423_v32  ;;  %v512_v33 = vpop.permute.xlu1 %511  ;;  %v357_v37 = vpop.permute.xlu0 %356 }
 0x24d   :  { %1552 = vmatpush.xpose.msk.msra.mxu0 %vm119_vm0, %v512_v33  ;;  %v365_v31 = vadd.f32 %v357_v37, %v325_v39 }
 0x24f   :  { %v427_v41 = vmul.f32 %v2107_v22, %v365_v31  ;;  %v429_v45 = vmul.f32 %v2121_v25, %v365_v31  ;;  %v431_v43 = vmul.f32 %v2136_v5, %v365_v31  ;;  %v433_v48 = vmul.f32 %v2158_v42, %v365_v31 }
 0x250   :  { %1553 = vmatmul.msk.f32.vlgmr.msra.gmra.mxu0 %vm119_vm0, %v426_v36 }
 0x254   :  { %1549 = vmatmul.msk.f32.gmra.mxu3 %vm119_vm0, %v424_v40 }
 0x258   :  { %1554 = vmatmul.msk.f32.gmra.mxu0 %vm119_vm0, %v427_v41 }
 0x25c   :  { %1550 = vmatmul.msk.f32.gmra.mxu3 %vm119_vm0, %v425_v44 }
 0x260   :  { %1555 = vmatmul.msk.f32.gmra.mxu0 %vm119_vm0, %v428_v35 }
 0x268   :  { %1556 = vmatmul.msk.f32.gmra.mxu0 %vm119_vm0, %v429_v45 }
 0x270   :  { %1557 = vmatmul.msk.f32.gmra.mxu0 %vm119_vm0, %v430_v46 }
 0x278   :  { %1558 = vmatmul.msk.f32.gmra.mxu0 %vm119_vm0, %v431_v43 }
 0x280   :  { %1559 = vmatmul.msk.f32.gmra.mxu0 %vm119_vm0, %v432_v47 }
 0x288   :  { %1560 = vmatmul.msk.f32.gmra.mxu0 %vm119_vm0, %v433_v48 }
 0x2a7   :  { %v485_v49 = vpop.f32.mrf.mxu3 }
 0x2a8   :  { %v585_v50 = vsel %vm584_vm14, %v485_v49, -inf }
 0x2a9   :  { %586 = vmax.xlane.f32.xlu2 %v585_v50 }
 0x2af   :  { %v488_v51 = vpop.f32.mrf.mxu3 }
 0x2b0   :  { %v588_v52 = vsel %vm584_vm14, %v488_v51, -inf }
 0x2b1   :  { %589 = vmax.xlane.f32.xlu1 %v588_v52 }
 0x2b7   :  { %v491_v53 = vpop.f32.mrf.mxu3 }
 0x2b8   :  { %v591_v54 = vsel %vm584_vm14, %v491_v53, -inf }
 0x2b9   :  { %592 = vmax.xlane.f32.xlu2 %v591_v54 }
 0x2bf   :  { %v2178_v55 = vpop.f32.mrf.mxu3 }
 0x2c0   :  { %v594_v61 = vsel %vm584_vm14, %v2178_v55, -inf }
 0x2c7   :  { %v2181_v59 = vpop.f32.mrf.mxu3 }
 0x2c8   :  { %v597_v2 = vsel %vm584_vm14, %v2181_v59, -inf }
 0x2cd   :  { %v560_v57 = vpop.f32.mrf.mxu0 }
 0x2ce   :  { %v609_v58 = vsel %vm584_vm14, %v560_v57, -inf }
 0x2cf   :  { %610 = vmax.xlane.f32.xlu0 %v609_v58  ;;  %v2195_v6 = vpop.f32.mrf.mxu3 }
 0x2d0   :  { %v600_v8 = vsel %vm584_vm14, %v2195_v6, -inf }
 0x2d5   :  { %v2183_v60 = vpop.f32.mrf.mxu0 }
 0x2d6   :  { %v612_v62 = vsel %vm584_vm14, %v2183_v60, -inf }
 0x2d7   :  { %595 = vmax.xlane.f32.xlu0 %v594_v61  ;;  %613 = vmax.xlane.f32.xlu1 %v612_v62  ;;  %v2203_v10 = vpop.f32.mrf.mxu3 }
 0x2d8   :  { %v603_v12 = vsel %vm584_vm14, %v2203_v10, -inf }
 0x2dd   :  { %v2189_v63 = vpop.f32.mrf.mxu0 }
 0x2de   :  { %v615_v3 = vsel %vm584_vm14, %v2189_v63, -inf }
 0x2df   :  { %598 = vmax.xlane.f32.xlu1 %v597_v2  ;;  %616 = vmax.xlane.f32.xlu2 %v615_v3  ;;  %v2211_v14 = vpop.f32.mrf.mxu3 }
 0x2e0   :  { %v606_v16 = vsel %vm584_vm14, %v2211_v14, -inf }
 0x2e5   :  { %v2197_v7 = vpop.f32.mrf.mxu0 }
 0x2e6   :  { %v618_v9 = vsel %vm584_vm14, %v2197_v7, -inf }
 0x2e7   :  { %601 = vmax.xlane.f32.xlu2 %v600_v8  ;;  %619 = vmax.xlane.f32.xlu0 %v618_v9 }
 0x2ed   :  { %v2205_v11 = vpop.f32.mrf.mxu0 }
 0x2ee   :  { %v621_v13 = vsel %vm584_vm14, %v2205_v11, -inf }
 0x2ef   :  { %604 = vmax.xlane.f32.xlu0 %v603_v12  ;;  %622 = vmax.xlane.f32.xlu1 %v621_v13 }
 0x2f5   :  { %v2213_v15 = vpop.f32.mrf.mxu0 }
 0x2f6   :  { %v624_v18 = vsel %vm584_vm14, %v2213_v15, -inf }
 0x2f7   :  { %607 = vmax.xlane.f32.xlu0 %v606_v16  ;;  %625 = vmax.xlane.f32.xlu2 %v624_v18 }
 0x2fd   :  { %v2219_v19 = vpop.f32.mrf.mxu0 }
 0x2fe   :  { %v627_v20 = vsel %vm584_vm14, %v2219_v19, -inf }
 0x2ff   :  { %628 = vmax.xlane.f32.xlu2 %v627_v20 }
 0x305   :  { %v2223_v56 = vpop.f32.mrf.mxu0 }
 0x306   :  { %v630_v21 = vsel %vm584_vm14, %v2223_v56, -inf }
 0x307   :  { %631 = vmax.xlane.f32.xlu2 %v630_v21 }
 0x31c   :  { %v587_v23 = vpop.xlane.xlu2 %586 }
 0x31d   :  { %v633_v24 = vsub.f32 %v485_v49, %v587_v23 }
 0x31f   :  { %v649_v26 = vmul.f32 1.442695, %v633_v24 }
 0x321   :  { %1647 = vpow2.f32 %v649_v26 }
 0x324   :  { %v590_v28 = vpop.xlane.xlu1 %589 }
 0x325   :  { %v634_v29 = vsub.f32 %v488_v51, %v590_v28 }
 0x327   :  { %v2227_v4 = vpop.eup %1647  ;;  %v651_v30 = vmul.f32 1.442695, %v634_v29 }
 0x328   :  { %v681_v0 = vsel %vm584_vm14, %v2227_v4, 0.0 }
 0x329   :  { %1649 = vpow2.f32 %v651_v30  ;;  %682 = vadd.xlane.f32.xlu1 %v681_v0 }
 0x32c   :  { %v593_v32 = vpop.xlane.xlu2 %592 }
 0x32d   :  { %v635_v33 = vsub.f32 %v491_v53, %v593_v32 }
 0x32f   :  { %v2231_v36 = vpop.eup %1649  ;;  %v653_v37 = vmul.f32 1.442695, %v635_v33 }
 0x330   :  { %v684_v39 = vsel %vm584_vm14, %v2231_v36, 0.0 }
 0x331   :  { %1651 = vpow2.f32 %v653_v37  ;;  %685 = vadd.xlane.f32.xlu1 %v684_v39 }
 0x337   :  { %v2235_v31 = vpop.eup %1651 }
 0x338   :  { %v687_v40 = vsel %vm584_vm14, %v2235_v31, 0.0 }
 0x339   :  { %688 = vadd.xlane.f32.xlu1 %v687_v40 }
 0x342   :  { %v611_v41 = vpop.xlane.xlu0 %610 }
 0x343   :  { %v641_v44 = vsub.f32 %v560_v57, %v611_v41 }
 0x345   :  { %v665_v35 = vmul.f32 1.442695, %v641_v44 }
 0x347   :  { %1653 = vpow2.f32 %v665_v35 }
 0x34a   :  { %v596_v45 = vpop.xlane.xlu0 %595  ;;  %v614_v46 = vpop.xlane.xlu1 %613 }
 0x34b   :  { %v636_v43 = vsub.f32 %v2178_v55, %v596_v45  ;;  %v642_v47 = vsub.f32 %v2183_v60, %v614_v46 }
 0x34d   :  { %v2241_v48 = vpop.eup %1653  ;;  %v655_v49 = vmul.f32 1.442695, %v636_v43  ;;  %v667_v50 = vmul.f32 1.442695, %v642_v47 }
 0x34e   :  { %v705_v51 = vsel %vm584_vm14, %v2241_v48, 0.0 }
 0x34f   :  { %1655 = vpow2.f32 %v655_v49  ;;  %706 = vadd.xlane.f32.xlu0 %v705_v51 }
 0x350   :  { %1657 = vpow2.f32 %v667_v50 }
 0x352   :  { %v617_v52 = vpop.xlane.xlu2 %616  ;;  %v599_v53 = vpop.xlane.xlu1 %598 }
 0x353   :  { %v643_v54 = vsub.f32 %v2189_v63, %v617_v52  ;;  %v637_v57 = vsub.f32 %v2181_v59, %v599_v53 }
 0x355   :  { %v2247_v58 = vpop.eup %1655  ;;  %v669_v55 = vmul.f32 1.442695, %v643_v54  ;;  %v657_v60 = vmul.f32 1.442695, %v637_v57 }
 0x356   :  { %v2249_v61 = vpop.eup %1657  ;;  %v690_v62 = vsel %vm584_vm14, %v2247_v58, 0.0 }
 0x357   :  { %1659 = vpow2.f32 %v669_v55  ;;  %691 = vadd.xlane.f32.xlu2 %v690_v62  ;;  %v708_v2 = vsel %vm584_vm14, %v2249_v61, 0.0 }
 0x358   :  { %1661 = vpow2.f32 %v657_v60  ;;  %709 = vadd.xlane.f32.xlu0 %v708_v2 }
 0x35a   :  { %v602_v3 = vpop.xlane.xlu2 %601  ;;  %v620_v63 = vpop.xlane.xlu0 %619 }
 0x35b   :  { %v638_v59 = vsub.f32 %v2195_v6, %v602_v3  ;;  %v644_v8 = vsub.f32 %v2197_v7, %v620_v63 }
 0x35d   :  { %v2257_v9 = vpop.eup %1659  ;;  %v659_v12 = vmul.f32 1.442695, %v638_v59  ;;  %v671_v13 = vmul.f32 1.442695, %v644_v8 }
 0x35e   :  { %v2259_v16 = vpop.eup %1661  ;;  %v711_v18 = vsel %vm584_vm14, %v2257_v9, 0.0 }
 0x35f   :  { %1663 = vpow2.f32 %v659_v12  ;;  %712 = vadd.xlane.f32.xlu1 %v711_v18  ;;  %v693_v20 = vsel %vm584_vm14, %v2259_v16, 0.0 }
 0x360   :  { %1665 = vpow2.f32 %v671_v13  ;;  %694 = vadd.xlane.f32.xlu0 %v693_v20 }
 0x362   :  { %v605_v21 = vpop.xlane.xlu0 %604  ;;  %v623_v6 = vpop.xlane.xlu1 %622 }
 0x363   :  { %v639_v7 = vsub.f32 %v2203_v10, %v605_v21  ;;  %v645_v23 = vsub.f32 %v2205_v11, %v623_v6 }
 0x365   :  { %v2267_v24 = vpop.eup %1663  ;;  %v661_v26 = vmul.f32 1.442695, %v639_v7  ;;  %v673_v28 = vmul.f32 1.442695, %v645_v23 }
 0x366   :  { %v2269_v29 = vpop.eup %1665  ;;  %v696_v30 = vsel %vm584_vm14, %v2267_v24, 0.0 }
 0x367   :  { %1667 = vpow2.f32 %v661_v26  ;;  %v714_v0 = vsel %vm584_vm14, %v2269_v29, 0.0  ;;  %697 = vadd.xlane.f32.xlu1 %v696_v30 }
 0x368   :  { %1669 = vpow2.f32 %v673_v28  ;;  %715 = vadd.xlane.f32.xlu2 %v714_v0 }
 0x36a   :  { %v608_v32 = vpop.xlane.xlu0 %607  ;;  %v626_v10 = vpop.xlane.xlu2 %625 }
 0x36b   :  { %v640_v11 = vsub.f32 %v2211_v14, %v608_v32  ;;  %v646_v33 = vsub.f32 %v2213_v15, %v626_v10 }
 0x36d   :  { %v2277_v37 = vpop.eup %1667  ;;  %v663_v39 = vmul.f32 1.442695, %v640_v11  ;;  %v675_v40 = vmul.f32 1.442695, %v646_v33 }
 0x36e   :  { %v2279_v41 = vpop.eup %1669  ;;  %v699_v44 = vsel %vm584_vm14, %v2277_v37, 0.0 }
 0x36f   :  { %1671 = vpow2.f32 %v663_v39  ;;  %v717_v35 = vsel %vm584_vm14, %v2279_v41, 0.0 }
 0x370   :  { %1673 = vpow2.f32 %v675_v40  ;;  %700 = vadd.xlane.f32.xlu2 %v699_v44  ;;  %718 = vadd.xlane.f32.xlu0 %v717_v35 }
 0x372   :  { %v629_v45 = vpop.xlane.xlu2 %628 }
 0x373   :  { %v647_v14 = vsub.f32 %v2219_v19, %v629_v45 }
 0x375   :  { %v2286_v15 = vpop.eup %1671  ;;  %v677_v46 = vmul.f32 1.442695, %v647_v14 }
 0x376   :  { %v2288_v43 = vpop.eup %1673  ;;  %v702_v47 = vsel %vm584_vm14, %v2286_v15, 0.0 }
 0x377   :  { %1675 = vpow2.f32 %v677_v46  ;;  %v720_v49 = vsel %vm584_vm14, %v2288_v43, 0.0 }
 0x378   :  { %721 = vadd.xlane.f32.xlu1 %v720_v49  ;;  %703 = vadd.xlane.f32.xlu0 %v702_v47 }
 0x37a   :  { %v632_v50 = vpop.xlane.xlu2 %631 }
 0x37b   :  { %v648_v51 = vsub.f32 %v2223_v56, %v632_v50 }
 0x37d   :  { %v2295_v52 = vpop.eup %1675  ;;  %v679_v19 = vmul.f32 1.442695, %v648_v51 }
 0x37e   :  { %v723_v53 = vsel %vm584_vm14, %v2295_v52, 0.0 }
 0x37f   :  { %1677 = vpow2.f32 %v679_v19  ;;  %724 = vadd.xlane.f32.xlu2 %v723_v53 }
 0x385   :  { %v2299_v54 = vpop.eup %1677 }
 0x386   :  { %v726_v57 = vsel %vm584_vm14, %v2299_v54, 0.0 }
 0x387   :  { %727 = vadd.xlane.f32.xlu1 %v726_v57 }
 0x39c   :  { %v683_v55 = vpop.xlane.xlu1 %682 }
 0x39d   :  { %1679 = vrcp.f32 %v683_v55 }
 0x3a3   :  { %v1680_v60 = vpop.eup %1679 }
 0x3a4   :  { %v686_v62 = vpop.xlane.xlu1 %685  ;;  %v745_v56 = vmul.f32 %v1680_v60, %v2227_v4 }
 0x3a5   :  { %1681 = vrcp.f32 %v686_v62 }
 0x3a6   :  { %1561 = vmatmul.msk.f32.vlgmr.msrb.gmra.mxu1 %vm584_vm14, %v745_v56 }
 0x3ab   :  { %v1682_v2 = vpop.eup %1681 }
 0x3ac   :  { %v689_v3 = vpop.xlane.xlu1 %688  ;;  %v746_v63 = vmul.f32 %v1682_v2, %v2231_v36 }
 0x3ad   :  { %1683 = vrcp.f32 %v689_v3 }
 0x3ae   :  { %1562 = vmatmul.msk.f32.gmra.mxu1 %vm584_vm14, %v746_v63 }
 0x3b3   :  { %v1684_v59 = vpop.eup %1683 }
 0x3b4   :  { %v747_v8 = vmul.f32 %v1684_v59, %v2235_v31 }
 0x3b6   :  { %1563 = vmatmul.msk.f32.gmra.mxu1 %vm584_vm14, %v747_v8 }
 0x3c2   :  { %v707_v12 = vpop.xlane.xlu0 %706 }
 0x3c3   :  { %1685 = vrcp.f32 %v707_v12 }
 0x3c9   :  { %v1686_v13 = vpop.eup %1685 }
 0x3ca   :  { %v753_v4 = vmul.f32 %v1686_v13, %v2241_v48  ;;  %v692_v18 = vpop.xlane.xlu2 %691 }
 0x3cb   :  { %1687 = vrcp.f32 %v692_v18  ;;  %v710_v20 = vpop.xlane.xlu0 %709 }
 0x3cc   :  { %1689 = vrcp.f32 %v710_v20  ;;  %1569 = vmatmul.msk.f32.vlgmr.msra.gmra.mxu2 %vm584_vm14, %v753_v4 }
 0x3d1   :  { %v1688_v36 = vpop.eup %1687 }
 0x3d2   :  { %v1690_v21 = vpop.eup %1689  ;;  %v713_v6 = vpop.xlane.xlu1 %712  ;;  %v748_v7 = vmul.f32 %v1688_v36, %v2247_v58 }
 0x3d3   :  { %v695_v23 = vpop.xlane.xlu0 %694  ;;  %1691 = vrcp.f32 %v713_v6  ;;  %v754_v31 = vmul.f32 %v1690_v21, %v2249_v61  ;;  %v907_v6 = vld [vmem:[#allocation10] sm:$0xff] }
 0x3d4   :  { %1693 = vrcp.f32 %v695_v23  ;;  %1564 = vmatmul.msk.f32.gmra.mxu1 %vm584_vm14, %v748_v7 }
 0x3d5   :  { %1570 = vmatmul.msk.f32.gmra.mxu2 %vm584_vm14, %v754_v31  ;;  %v908_v31 = vld [vmem:[#allocation10 + $0x8] sm:$0xff] }
 0x3d9   :  { %v1692_v48 = vpop.eup %1691 }
 0x3da   :  { %v1694_v26 = vpop.eup %1693  ;;  %v698_v28 = vpop.xlane.xlu1 %697  ;;  %v755_v30 = vmul.f32 %v1692_v48, %v2257_v9 }
 0x3db   :  { %v716_v0 = vpop.xlane.xlu2 %715  ;;  %1695 = vrcp.f32 %v698_v28  ;;  %v749_v32 = vmul.f32 %v1694_v26, %v2259_v16 }
 0x3dc   :  { %1697 = vrcp.f32 %v716_v0 }
 0x3dd   :  { %1565 = vmatmul.msk.f32.gmra.mxu1 %vm584_vm14, %v749_v32  ;;  %1571 = vmatmul.msk.f32.gmra.mxu2 %vm584_vm14, %v755_v30  ;;  %v962_v32 = vld [vmem:[%s2695_s2 + $0x8] sm:$0xff] }
 0x3e1   :  { %v1696_v58 = vpop.eup %1695 }
 0x3e2   :  { %v1698_v61 = vpop.eup %1697  ;;  %v750_v10 = vmul.f32 %v1696_v58, %v2267_v24  ;;  %v961_v58 = vld [vmem:[%s2695_s2] sm:$0xff] }
 0x3e3   :  { %v701_v11 = vpop.xlane.xlu2 %700  ;;  %v719_v33 = vpop.xlane.xlu0 %718  ;;  %v756_v39 = vmul.f32 %v1698_v61, %v2269_v29 }
 0x3e4   :  { %1699 = vrcp.f32 %v701_v11 }
 0x3e5   :  { %1701 = vrcp.f32 %v719_v33  ;;  %1566 = vmatmul.msk.f32.gmra.mxu1 %vm584_vm14, %v750_v10  ;;  %1572 = vmatmul.msk.f32.gmra.mxu2 %vm584_vm14, %v756_v39 }
 0x3ea   :  { %v1700_v9 = vpop.eup %1699 }
 0x3eb   :  { %v1702_v16 = vpop.eup %1701  ;;  %v704_v40 = vpop.xlane.xlu0 %703  ;;  %v751_v35 = vmul.f32 %v1700_v9, %v2277_v37  ;;  %v1751_v9 = vld [vmem:[#allocation2] sm:$0xff] }
 0x3ec   :  { %v722_v44 = vpop.xlane.xlu1 %721  ;;  %1703 = vrcp.f32 %v704_v40  ;;  %v757_v45 = vmul.f32 %v1702_v16, %v2279_v41 }
 0x3ed   :  { %1705 = vrcp.f32 %v722_v44  ;;  %1567 = vmatmul.msk.f32.gmra.mxu1 %vm584_vm14, %v751_v35 }
 0x3ee   :  { %1573 = vmatmul.msk.f32.gmra.mxu2 %vm584_vm14, %v757_v45  ;;  %v1752_v45 = vld [vmem:[#allocation2 + $0x8] sm:$0xff] }
 0x3f2   :  { %v1704_v24 = vpop.eup %1703  ;;  %v725_v29 = vpop.xlane.xlu2 %724 }
 0x3f3   :  { %v1706_v14 = vpop.eup %1705  ;;  %1707 = vrcp.f32 %v725_v29  ;;  %v752_v46 = vmul.f32 %v1704_v24, %v2286_v15 }
 0x3f4   :  { %v758_v47 = vmul.f32 %v1706_v14, %v2288_v43 }
 0x3f5   :  { %1568 = vmatmul.msk.f32.gmra.mxu1 %vm584_vm14, %v752_v46 }
 0x3f6   :  { %1574 = vmatmul.msk.f32.gmra.mxu2 %vm584_vm14, %v758_v47  ;;  %v1753_v47 = vld [vmem:[#allocation2 + $0x10] sm:$0xff] }
 0x3f9   :  { %v1708_v37 = vpop.eup %1707 }
 0x3fa   :  { %v728_v49 = vpop.xlane.xlu1 %727  ;;  %v759_v41 = vmul.f32 %v1708_v37, %v2295_v52 }
 0x3fb   :  { %1709 = vrcp.f32 %v728_v49 }
 0x3fe   :  { %1575 = vmatmul.msk.f32.gmra.mxu2 %vm584_vm14, %v759_v41 }
 0x401   :  { %v1710_v50 = vpop.eup %1709 }
 0x402   :  { %v760_v51 = vmul.f32 %v1710_v50, %v2299_v54 }
 0x406   :  { %1576 = vmatmul.msk.f32.gmra.mxu2 %vm584_vm14, %v760_v51  ;;  %v1754_v51 = vld [vmem:[#allocation2 + $0x18] sm:$0xff] }
 0x423   :  { %v802_v19 = vpop.f32.mrf.mxu1 }
 0x424   :  { %v891_v36 = vmul.f32 %v802_v19, %v2097_v17 }
 0x42b   :  { %v805_v15 = vpop.f32.mrf.mxu1 }
 0x42c   :  { %v892_v20 = vmul.f32 %v805_v15, %v2107_v22 }
 0x433   :  { %v808_v53 = vpop.f32.mrf.mxu1 }
 0x434   :  { %v893_v18 = vmul.f32 %v808_v53, %v2114_v1 }
 0x44f   :  { %v867_v43 = vpop.f32.mrf.mxu2 }
 0x451   :  { %v811_v57 = vpop.f32.mrf.mxu1 }
 0x452   :  { %v894_v4 = vmul.f32 %v811_v57, %v2121_v25  ;;  %v1111_v57 = vld [vmem:[%s2696_s3 + $0xe8] sm:$0xff] }
 0x453   :  { %1163 = vmatpush.msra.mxu1 %v1111_v57 }
 0x458   :  { %v870_v55 = vpop.f32.mrf.mxu2 }
 0x45a   :  { %v814_v60 = vpop.f32.mrf.mxu1 }
 0x45b   :  { %v895_v12 = vmul.f32 %v814_v60, %v2128_v27  ;;  %v1113_v60 = vld [vmem:[%s2696_s3 + $0xf8] sm:$0xff] }
 0x460   :  { %v873_v62 = vpop.f32.mrf.mxu2 }
 0x461   :  { %v901_v0 = vmul.f32 %v873_v62, %v2114_v1  ;;  %v964_v1 = vld [vmem:[%s2695_s2 + $0x18] sm:$0xff]  ;;  %v1106_v62 = vld [vmem:[%s2696_s3 + $0xc0] sm:$0xff] }
 0x462   :  { %v817_v56 = vpop.f32.mrf.mxu1 }
 0x463   :  { %v896_v54 = vmul.f32 %v817_v56, %v2136_v5  ;;  %v1107_v56 = vld [vmem:[%s2696_s3 + $0xc8] sm:$0xff] }
 0x464   :  { %1164 = vmatpush.msra.mxu1 %v1107_v56 }
 0x468   :  { %v876_v2 = vpop.f32.mrf.mxu2 }
 0x469   :  { %v902_v30 = vmul.f32 %v876_v2, %v2121_v25  ;;  %v967_v25 = vld [vmem:[%s2695_s2 + $0x30] sm:$0xff] }
 0x46a   :  { %v820_v3 = vpop.f32.mrf.mxu1  ;;  %v1108_v2 = vld [vmem:[%s2696_s3 + $0xd0] sm:$0xff] }
 0x46b   :  { %v897_v8 = vmul.f32 %v820_v3, %v2147_v38  ;;  %v1109_v3 = vld [vmem:[%s2696_s3 + $0xd8] sm:$0xff] }
 0x471   :  { %v879_v52 = vpop.f32.mrf.mxu2 }
 0x472   :  { %v823_v63 = vpop.f32.mrf.mxu1  ;;  %v903_v28 = vmul.f32 %v879_v52, %v2128_v27  ;;  %v963_v27 = vld [vmem:[%s2695_s2 + $0x10] sm:$0xff]  ;;  %v1102_v52 = vld [vmem:[%s2696_s3 + $0xa0] sm:$0xff] }
 0x473   :  { %v898_v59 = vmul.f32 %v823_v63, %v2158_v42  ;;  %v1103_v63 = vld [vmem:[%s2696_s3 + $0xa8] sm:$0xff] }
 0x474   :  { %1165 = vmatpush.msra.mxu1 %v1103_v63 }
 0x475   :  { %923 = vmatpush.msrb.mxu3 %v898_v59  ;;  %v1104_v59 = vld [vmem:[%s2696_s3 + $0xb0] sm:$0xff] }
 0x477   :  { %924 = vmatpush.msrb.mxu3 %v897_v8  ;;  %v1105_v8 = vld [vmem:[%s2696_s3 + $0xb8] sm:$0xff] }
 0x479   :  { %v882_v13 = vpop.f32.mrf.mxu2  ;;  %925 = vmatpush.msrb.mxu3 %v896_v54  ;;  %v1098_v54 = vld [vmem:[%s2696_s3 + $0x80] sm:$0xff] }
 0x47a   :  { %v904_v26 = vmul.f32 %v882_v13, %v2136_v5  ;;  %v968_v5 = vld [vmem:[%s2695_s2 + $0x38] sm:$0xff]  ;;  %v1100_v13 = vld [vmem:[%s2696_s3 + $0x90] sm:$0xff] }
 0x47b   :  { %926 = vmatpush.msrb.mxu3 %v895_v12  ;;  %v1099_v12 = vld [vmem:[%s2696_s3 + $0x88] sm:$0xff] }
 0x47c   :  { %1166 = vmatpush.msra.mxu1 %v1099_v12 }
 0x47d   :  { %927 = vmatpush.msrb.mxu3 %v894_v4  ;;  %v1101_v4 = vld [vmem:[%s2696_s3 + $0x98] sm:$0xff] }
 0x47f   :  { %928 = vmatpush.msrb.mxu3 %v893_v18  ;;  %v1094_v18 = vld [vmem:[%s2696_s3 + $0x60] sm:$0xff] }
 0x481   :  { %v885_v21 = vpop.f32.mrf.mxu2  ;;  %929 = vmatpush.msrb.mxu3 %v892_v20  ;;  %v1095_v20 = vld [vmem:[%s2696_s3 + $0x68] sm:$0xff] }
 0x482   :  { %v905_v48 = vmul.f32 %v885_v21, %v2147_v38  ;;  %v899_v38 = vmul.f32 %v867_v43, %v2097_v17  ;;  %v965_v17 = vld [vmem:[%s2695_s2 + $0x20] sm:$0xff]  ;;  %1167 = vmatpush.msra.mxu1 %v1095_v20  ;;  %v1097_v21 = vld [vmem:[%s2696_s3 + $0x78] sm:$0xff] }
 0x483   :  { %930 = vmatpush.msrb.mxu3 %v891_v36  ;;  %v1110_v43 = vld [vmem:[%s2696_s3 + $0xe0] sm:$0xff]  ;;  %v1096_v36 = vld [vmem:[%s2696_s3 + $0x70] sm:$0xff]  ;;  %v1441_v20 = vld [vmem:[%s2697_s4 + $0xf8] sm:$0xff] }
 0x484   :  { %1577 = vmatmul.msk.f32.vlgmr.msrb.gmra.mxu3 %vm119_vm0, %v907_v6  ;;  %1134 = vmatpush.msrb.mxu0 %v1110_v43 }
 0x486   :  { %1135 = vmatpush.msrb.mxu0 %v1106_v62 }
 0x488   :  { %1136 = vmatpush.msrb.mxu0 %v1102_v52 }
 0x489   :  { %v888_v7 = vpop.f32.mrf.mxu2 }
 0x48a   :  { %v906_v23 = vmul.f32 %v888_v7, %v2158_v42  ;;  %v900_v42 = vmul.f32 %v870_v55, %v2107_v22  ;;  %v966_v22 = vld [vmem:[%s2695_s2 + $0x28] sm:$0xff]  ;;  %v1112_v55 = vld [vmem:[%s2696_s3 + $0xf0] sm:$0xff]  ;;  %1137 = vmatpush.msrb.mxu0 %v1098_v54 }
 0x48b   :  { %1192 = vmatpush.msrb.mxu2 %v1112_v55  ;;  %v1091_v7 = vld [vmem:[%s2696_s3 + $0x48] sm:$0xff] }
 0x48c   :  { %946 = vmatpush.msra.mxu3 %v906_v23  ;;  %1138 = vmatpush.msrb.mxu0 %v1094_v18  ;;  %v1092_v23 = vld [vmem:[%s2696_s3 + $0x50] sm:$0xff]  ;;  %v1425_v18 = vld [vmem:[%s2697_s4 + $0x78] sm:$0xff] }
 0x48d   :  { %1578 = vmatmul.msk.f32.gmra.mxu3 %vm119_vm0, %v908_v31  ;;  %1193 = vmatpush.msrb.mxu2 %v1108_v2 }
 0x48e   :  { %947 = vmatpush.msra.mxu3 %v905_v48  ;;  %1168 = vmatpush.msra.mxu1 %v1091_v7  ;;  %v1086_v48 = vld [vmem:[%s2696_s3 + $0x20] sm:$0xff]  ;;  %v1439_v7 = vld [vmem:[%s2697_s4 + $0xe8] sm:$0xff] }
 0x48f   :  { %1194 = vmatpush.msrb.mxu2 %v1104_v59 }
 0x490   :  { %948 = vmatpush.msra.mxu3 %v904_v26  ;;  %v1087_v26 = vld [vmem:[%s2696_s3 + $0x28] sm:$0xff] }
 0x491   :  { %1195 = vmatpush.msrb.mxu2 %v1100_v13  ;;  %1169 = vmatpush.msra.mxu1 %v1087_v26  ;;  %v1437_v26 = vld [vmem:[%s2697_s4 + $0xd8] sm:$0xff] }
 0x492   :  { %949 = vmatpush.msra.mxu3 %v903_v28  ;;  %v1088_v28 = vld [vmem:[%s2696_s3 + $0x30] sm:$0xff] }
 0x493   :  { %1196 = vmatpush.msrb.mxu2 %v1096_v36  ;;  %v1424_v36 = vld [vmem:[%s2697_s4 + $0x70] sm:$0xff] }
 0x494   :  { %950 = vmatpush.msra.mxu3 %v902_v30  ;;  %v1089_v30 = vld [vmem:[%s2696_s3 + $0x38] sm:$0xff] }
 0x495   :  { %1197 = vmatpush.msrb.mxu2 %v1092_v23  ;;  %v1422_v23 = vld [vmem:[%s2697_s4 + $0x60] sm:$0xff] }
 0x496   :  { %951 = vmatpush.msra.mxu3 %v901_v0  ;;  %v1082_v0 = vld [vmem:[%s2696_s3] sm:$0xff] }
 0x497   :  { %1198 = vmatpush.msrb.mxu2 %v1088_v28  ;;  %v1420_v28 = vld [vmem:[%s2697_s4 + $0x50] sm:$0xff] }
 0x498   :  { %952 = vmatpush.msra.mxu3 %v900_v42  ;;  %v1083_v42 = vld [vmem:[%s2696_s3 + $0x8] sm:$0xff] }
 0x499   :  { %1170 = vmatpush.msra.mxu1 %v1083_v42  ;;  %v1435_v42 = vld [vmem:[%s2697_s4 + $0xc8] sm:$0xff] }
 0x49a   :  { %953 = vmatpush.msra.mxu3 %v899_v38  ;;  %v1084_v38 = vld [vmem:[%s2696_s3 + $0x10] sm:$0xff] }
 0x49b   :  { %1579 = vmatmul.msk.f32.vlgmr.msra.gmra.mxu3 %vm119_vm0, %v907_v6  ;;  %v1090_v6 = vld [vmem:[%s2696_s3 + $0x40] sm:$0xff]  ;;  %1199 = vmatpush.msrb.mxu2 %v1084_v38 }
 0x49c   :  { %989 = vmatpush.msrb.mxu3 %v968_v5  ;;  %1139 = vmatpush.msrb.mxu0 %v1090_v6  ;;  %v1085_v5 = vld [vmem:[%s2696_s3 + $0x18] sm:$0xff]  ;;  %v1423_v6 = vld [vmem:[%s2697_s4 + $0x68] sm:$0xff]  ;;  %v1418_v38 = vld [vmem:[%s2697_s4 + $0x40] sm:$0xff] }
 0x49d   :  { %1471 = vmatpush.msrb.mxu1 %v1441_v20 }
 0x49e   :  { %990 = vmatpush.msrb.mxu3 %v967_v25  ;;  %1140 = vmatpush.msrb.mxu0 %v1086_v48  ;;  %v1421_v48 = vld [vmem:[%s2697_s4 + $0x58] sm:$0xff] }
 0x4a0   :  { %991 = vmatpush.msrb.mxu3 %v966_v22  ;;  %1141 = vmatpush.msrb.mxu0 %v1082_v0  ;;  %v1419_v0 = vld [vmem:[%s2697_s4 + $0x48] sm:$0xff] }
 0x4a2   :  { %992 = vmatpush.msrb.mxu3 %v965_v17  ;;  %1442 = vmatpush.msra.mxu0 %v1425_v18 }
 0x4a3   :  { %1580 = vmatmul.msk.f32.gmra.mxu3 %vm119_vm0, %v908_v31  ;;  %v1093_v31 = vld [vmem:[%s2696_s3 + $0x58] sm:$0xff] }
 0x4a4   :  { %993 = vmatpush.msrb.mxu3 %v964_v1  ;;  %1443 = vmatpush.msra.mxu0 %v1424_v36 }
 0x4a6   :  { %994 = vmatpush.msrb.mxu3 %v963_v27  ;;  %1444 = vmatpush.msra.mxu0 %v1423_v6 }
 0x4a8   :  { %995 = vmatpush.msrb.mxu3 %v962_v32  ;;  %1445 = vmatpush.msra.mxu0 %v1422_v23 }
 0x4aa   :  { %996 = vmatpush.msrb.mxu3 %v961_v58  ;;  %1446 = vmatpush.msra.mxu0 %v1421_v48 }
 0x4ac   :  { %1221 = vmatpush.msra.mxu3 %v1113_v60  ;;  %1447 = vmatpush.msra.mxu0 %v1420_v28 }
 0x4ae   :  { %1222 = vmatpush.msra.mxu3 %v1109_v3  ;;  %1448 = vmatpush.msra.mxu0 %v1419_v0 }
 0x4b0   :  { %1223 = vmatpush.msra.mxu3 %v1105_v8  ;;  %1449 = vmatpush.msra.mxu0 %v1418_v38 }
 0x4b2   :  { %1224 = vmatpush.msra.mxu3 %v1101_v4 }
 0x4b4   :  { %1225 = vmatpush.msra.mxu3 %v1097_v21  ;;  %v1440_v21 = vld [vmem:[%s2697_s4 + $0xf0] sm:$0xff] }
 0x4b5   :  { %1472 = vmatpush.msrb.mxu1 %v1440_v21 }
 0x4b6   :  { %1226 = vmatpush.msra.mxu3 %v1093_v31  ;;  %v1438_v31 = vld [vmem:[%s2697_s4 + $0xe0] sm:$0xff] }
 0x4b7   :  { %1473 = vmatpush.msrb.mxu1 %v1439_v7 }
 0x4b8   :  { %1227 = vmatpush.msra.mxu3 %v1089_v30  ;;  %v1436_v30 = vld [vmem:[%s2697_s4 + $0xd0] sm:$0xff] }
 0x4b9   :  { %1474 = vmatpush.msrb.mxu1 %v1438_v31 }
 0x4ba   :  { %1228 = vmatpush.msra.mxu3 %v1085_v5  ;;  %v1434_v5 = vld [vmem:[%s2697_s4 + $0xc0] sm:$0xff] }
 0x4bb   :  { %1475 = vmatpush.msrb.mxu1 %v1437_v26 }
 0x4bd   :  { %1476 = vmatpush.msrb.mxu1 %v1436_v30 }
 0x4bf   :  { %1477 = vmatpush.msrb.mxu1 %v1435_v42 }
 0x4c1   :  { %1478 = vmatpush.msrb.mxu1 %v1434_v5 }
 0x507   :  { %v932_v61 = vpop.f32.mrf.mxu3 }
 0x508   :  { %1581 = vmatmul.msk.f32.vlgmr.msrb.gmra.mxu3 %vm119_vm0, %v932_v61 }
 0x510   :  { %v935_v10 = vpop.f32.mrf.mxu3 }
 0x511   :  { %1582 = vmatmul.msk.f32.gmra.mxu3 %vm119_vm0, %v935_v10 }
 0x51e   :  { %v955_v11 = vpop.f32.mrf.mxu3 }
 0x51f   :  { %1583 = vmatmul.msk.f32.gmra.mxu3 %vm119_vm0, %v955_v11 }
 0x526   :  { %v958_v33 = vpop.f32.mrf.mxu3 }
 0x527   :  { %1584 = vmatmul.msk.f32.gmra.mxu3 %vm119_vm0, %v958_v33 }
 0x58b   :  { %v998_v39 = vpop.f32.mrf.mxu3 }
 0x58c   :  { %v2383_v16 = vadd.f32 %v1751_v9, %v998_v39 }
 0x58e   :  { %v1014_v40 = vmul.f32 %v2383_v16, %v2383_v16 }
 0x590   :  { %v1018_v44 = vsel %vm119_vm0, %v1014_v40, 0.0 }
 0x591   :  { %1019 = vadd.xlane.f32.xlu0 %v1018_v44 }
 0x594   :  { %v1001_v35 = vpop.f32.mrf.mxu3 }
 0x595   :  { %v2388_v24 = vadd.f32 %v1752_v45, %v1001_v35 }
 0x597   :  { %v1015_v29 = vmul.f32 %v2388_v24, %v2388_v24 }
 0x599   :  { %v1021_v14 = vsel %vm119_vm0, %v1015_v29, 0.0 }
 0x59a   :  { %1022 = vadd.xlane.f32.xlu2 %v1021_v14 }
 0x5a2   :  { %v1004_v46 = vpop.f32.mrf.mxu3 }
 0x5a3   :  { %v2393_v37 = vadd.f32 %v1753_v47, %v1004_v46 }
 0x5a5   :  { %v1016_v49 = vmul.f32 %v2393_v37, %v2393_v37 }
 0x5a7   :  { %v1024_v41 = vsel %vm119_vm0, %v1016_v49, 0.0 }
 0x5a8   :  { %1025 = vadd.xlane.f32.xlu1 %v1024_v41 }
 0x5aa   :  { %v1007_v50 = vpop.f32.mrf.mxu3 }
 0x5ab   :  { %v2398_v19 = vadd.f32 %v1754_v51, %v1007_v50 }
 0x5ad   :  { %v1017_v15 = vmul.f32 %v2398_v19, %v2398_v19 }
 0x5af   :  { %v1027_v53 = vsel %vm119_vm0, %v1017_v15, 0.0 }
 0x5b0   :  { %1028 = vadd.xlane.f32.xlu0 %v1027_v53 }
 0x604   :  { %v1020_v25 = vpop.xlane.xlu0 %1019 }
 0x605   :  { %v1030_v22 = vmul.f32 %v1020_v25, %v2016_v34  ;;  %v1417_v25 = vld [vmem:[%s2697_s4 + $0x38] sm:$0xff] }
 0x606   :  { %1450 = vmatpush.msra.mxu0 %v1417_v25 }
 0x607   :  { %v1034_v17 = vadd.f32 1e-05, %v1030_v22  ;;  %v1433_v22 = vld [vmem:[%s2697_s4 + $0xb8] sm:$0xff] }
 0x608   :  { %1479 = vmatpush.msrb.mxu1 %v1433_v22 }
 0x609   :  { %1711 = vrsqrt.f32 %v1034_v17  ;;  %vm1044_vm15 = vweird.f32 %v1034_v17 }
 0x60d   :  { %v1023_v1 = vpop.xlane.xlu2 %1022 }
 0x60e   :  { %v1031_v27 = vmul.f32 %v1023_v1, %v2016_v34  ;;  %v1432_v1 = vld [vmem:[%s2697_s4 + $0xb0] sm:$0xff] }
 0x60f   :  { %v1712_v32 = vpop.eup %1711  ;;  %1480 = vmatpush.msrb.mxu1 %v1432_v1 }
 0x610   :  { %v1039_v58 = vmul.f32 %v1712_v32, %v1034_v17  ;;  %v1035_v61 = vadd.f32 1e-05, %v1031_v27  ;;  %vm1045_vm1 = vweird.f32 %v1712_v32  ;;  %v1416_v17 = vld [vmem:[%s2697_s4 + $0x30] sm:$0xff]  ;;  %v1415_v27 = vld [vmem:[%s2697_s4 + $0x28] sm:$0xff] }
 0x611   :  { %vm1046_vm2 = vmor %vm1044_vm15, %vm1045_vm1  ;;  %1451 = vmatpush.msra.mxu0 %v1416_v17 }
 0x612   :  { %v1040_v10 = vmul.f32 %v1712_v32, %v1039_v58  ;;  %1713 = vrsqrt.f32 %v1035_v61  ;;  %vm1054_vm3 = vweird.f32 %v1035_v61  ;;  %v1414_v58 = vld [vmem:[%s2697_s4 + $0x20] sm:$0xff] }
 0x613   :  { %1452 = vmatpush.msra.mxu0 %v1415_v27 }
 0x614   :  { %v1041_v11 = vmul.f32 0.5, %v1040_v10  ;;  %v1413_v10 = vld [vmem:[%s2697_s4 + $0x18] sm:$0xff] }
 0x615   :  { %1453 = vmatpush.msra.mxu0 %v1414_v58 }
 0x616   :  { %v1042_v33 = vsub.f32 1.5, %v1041_v11  ;;  %v1429_v11 = vld [vmem:[%s2697_s4 + $0x98] sm:$0xff] }
 0x617   :  { %1454 = vmatpush.msra.mxu0 %v1413_v10 }
 0x618   :  { %v1714_v39 = vpop.eup %1713  ;;  %v1043_v9 = vmul.f32 %v1712_v32, %v1042_v33 }
 0x619   :  { %v1049_v40 = vmul.f32 %v1714_v39, %v1035_v61  ;;  %vm1055_vm4 = vweird.f32 %v1714_v39  ;;  %v1430_v61 = vld [vmem:[%s2697_s4 + $0xa0] sm:$0xff] }
 0x61a   :  { %v1047_v44 = vsel %vm1046_vm2, %v1712_v32, %v1043_v9  ;;  %vm1056_vm5 = vmor %vm1054_vm3, %vm1055_vm4  ;;  %v1431_v32 = vld [vmem:[%s2697_s4 + $0xa8] sm:$0xff] }
 0x61b   :  { %v1078_v35 = vmul.f32 %v1047_v44, %v2383_v16  ;;  %v1050_v45 = vmul.f32 %v1714_v39, %v1049_v40  ;;  %v1026_v29 = vpop.xlane.xlu1 %1025  ;;  %1481 = vmatpush.msrb.mxu1 %v1431_v32  ;;  %v1412_v44 = vld [vmem:[%s2697_s4 + $0x10] sm:$0xff] }
 0x61c   :  { %v1032_v14 = vmul.f32 %v1026_v29, %v2016_v34  ;;  %1455 = vmatpush.msra.mxu0 %v1412_v44  ;;  %v1427_v29 = vld [vmem:[%s2697_s4 + $0x88] sm:$0xff] }
 0x61d   :  { %v1051_v46 = vmul.f32 0.5, %v1050_v45  ;;  %1585 = vmatmul.msk.f32.vlgmr.msrb.gmra.mxu0 %vm119_vm0, %v1078_v35  ;;  %1589 = vmatmul.msk.f32.vlgmr.msra.gmra.mxu1 %vm119_vm0, %v1078_v35  ;;  %v1411_v45 = vld [vmem:[%s2697_s4 + $0x8] sm:$0xff] }
 0x61e   :  { %v1036_v47 = vadd.f32 1e-05, %v1032_v14  ;;  %1593 = vmatmul.msk.f32.vlgmr.msrb.gmra.mxu2 %vm119_vm0, %v1078_v35  ;;  %1597 = vmatmul.msk.f32.vlgmr.msra.gmra.mxu3 %vm119_vm0, %v1078_v35  ;;  %v1428_v35 = vld [vmem:[%s2697_s4 + $0x90] sm:$0xff]  ;;  %v1410_v14 = vld [vmem:[%s2697_s4] sm:$0xff] }
 0x61f   :  { %v1052_v49 = vsub.f32 1.5, %v1051_v46  ;;  %1482 = vmatpush.msrb.mxu1 %v1430_v61  ;;  %1456 = vmatpush.msra.mxu0 %v1411_v45  ;;  %v1426_v46 = vld [vmem:[%s2697_s4 + $0x80] sm:$0xff]  ;;  %s1918_s4 = smov [#allocation11]  }
 0x620   :  { %1715 = vrsqrt.f32 %v1036_v47  ;;  %vm1064_vm7 = vweird.f32 %v1036_v47  ;;  %s1512_s15 = sshll.u32 %s1918_s4, 4  ;;  %s1513_s15 = int_to_ptr.vmem [resolvable:$true] %s1512_s15 }
 0x621   :  { %v1053_v41 = vmul.f32 %v1714_v39, %v1052_v49  ;;  %1483 = vmatpush.msrb.mxu1 %v1429_v11  ;;  %1457 = vmatpush.msra.mxu0 %v1410_v14 }
 0x623   :  { %v1029_v50 = vpop.xlane.xlu0 %1028  ;;  %v1057_v51 = vsel %vm1056_vm5, %v1714_v39, %v1053_v41  ;;  %1484 = vmatpush.msrb.mxu1 %v1428_v35 }
 0x624   :  { %v1033_v15 = vmul.f32 %v1029_v50, %v2016_v34  ;;  %v1079_v53 = vmul.f32 %v1057_v51, %v2388_v24 }
 0x625   :  { %1485 = vmatpush.msrb.mxu1 %v1427_v29 }
 0x626   :  { %v1716_v43 = vpop.eup %1715  ;;  %v1037_v57 = vadd.f32 1e-05, %v1033_v15  ;;  %1586 = vmatmul.msk.f32.gmra.mxu0 %vm119_vm0, %v1079_v53  ;;  %1590 = vmatmul.msk.f32.gmra.mxu1 %vm119_vm0, %v1079_v53 }
 0x627   :  { %v1059_v55 = vmul.f32 %v1716_v43, %v1036_v47  ;;  %1594 = vmatmul.msk.f32.gmra.mxu2 %vm119_vm0, %v1079_v53  ;;  %1598 = vmatmul.msk.f32.gmra.mxu3 %vm119_vm0, %v1079_v53  ;;  %vm1065_vm6 = vweird.f32 %v1716_v43 }
 0x628   :  { %1717 = vrsqrt.f32 %v1037_v57  ;;  %vm1066_vm8 = vmor %vm1064_vm7, %vm1065_vm6  ;;  %vm1074_vm10 = vweird.f32 %v1037_v57  ;;  %1486 = vmatpush.msrb.mxu1 %v1426_v46 }
 0x629   :  { %v1060_v60 = vmul.f32 %v1716_v43, %v1059_v55 }
 0x62b   :  { %v1061_v62 = vmul.f32 0.5, %v1060_v60 }
 0x62d   :  { %v1062_v56 = vsub.f32 1.5, %v1061_v62 }
 0x62e   :  { %v1718_v2 = vpop.eup %1717 }
 0x62f   :  { %v1063_v34 = vmul.f32 %v1716_v43, %v1062_v56  ;;  %v1069_v3 = vmul.f32 %v1718_v2, %v1037_v57  ;;  %vm1075_vm9 = vweird.f32 %v1718_v2 }
 0x630   :  { %vm1076_vm11 = vmor %vm1074_vm10, %vm1075_vm9 }
 0x631   :  { %v1070_v52 = vmul.f32 %v1718_v2, %v1069_v3  ;;  %v1067_v63 = vsel %vm1066_vm8, %v1716_v43, %v1063_v34 }
 0x632   :  { %v1080_v59 = vmul.f32 %v1067_v63, %v2393_v37 }
 0x633   :  { %v1071_v8 = vmul.f32 0.5, %v1070_v52 }
 0x634   :  { %1587 = vmatmul.msk.f32.gmra.mxu0 %vm119_vm0, %v1080_v59  ;;  %1591 = vmatmul.msk.f32.gmra.mxu1 %vm119_vm0, %v1080_v59 }
 0x635   :  { %v1072_v54 = vsub.f32 1.5, %v1071_v8  ;;  %1595 = vmatmul.msk.f32.gmra.mxu2 %vm119_vm0, %v1080_v59  ;;  %1599 = vmatmul.msk.f32.gmra.mxu3 %vm119_vm0, %v1080_v59 }
 0x637   :  { %v1073_v12 = vmul.f32 %v1718_v2, %v1072_v54 }
 0x639   :  { %v1077_v13 = vsel %vm1076_vm11, %v1718_v2, %v1073_v12 }
 0x63a   :  { %v1081_v4 = vmul.f32 %v1077_v13, %v2398_v19 }
 0x63c   :  { %1588 = vmatmul.msk.f32.gmra.mxu0 %vm119_vm0, %v1081_v4  ;;  %1592 = vmatmul.msk.f32.gmra.mxu1 %vm119_vm0, %v1081_v4 }
 0x63d   :  { %1596 = vmatmul.msk.f32.gmra.mxu2 %vm119_vm0, %v1081_v4  ;;  %1600 = vmatmul.msk.f32.gmra.mxu3 %vm119_vm0, %v1081_v4 }
 0x69a   :  { %v2601_v33 = vpop.f32.mrf.mxu0  ;;  %v2603_v39 = vpop.f32.mrf.mxu1 }
 0x69b   :  { %v1601_v9 = vmul.f32 -1.442695, %v2601_v33  ;;  %v1602_v40 = vmul.f32 -1.442695, %v2603_v39 }
 0x69d   :  { %1719 = vpow2.f32 %v1601_v9 }
 0x69e   :  { %1721 = vpow2.f32 %v1602_v40 }
 0x6a1   :  { %v1201_v25 = vpop.f32.mrf.mxu2  ;;  %v1230_v22 = vpop.f32.mrf.mxu3 }
 0x6a3   :  { %v1720_v47 = vpop.eup %1719  ;;  %v2625_v49 = vpop.f32.mrf.mxu0 }
 0x6a4   :  { %v2627_v41 = vpop.f32.mrf.mxu1  ;;  %v1722_v50 = vpop.eup %1721  ;;  %v1266_v51 = vadd.f32 1.0, %v1720_v47  ;;  %v1603_v15 = vmul.f32 -1.442695, %v2625_v49 }
 0x6a5   :  { %v1267_v53 = vadd.f32 1.0, %v1722_v50  ;;  %v1604_v43 = vmul.f32 -1.442695, %v2627_v41 }
 0x6a6   :  { %1723 = vrcp.f32 %v1266_v51  ;;  %v1283_v52 = vand.u32 2147483647, %v1266_v51  ;;  %v1285_v63 = vand.u32 2147483648, %v1266_v51  ;;  %vm1279_vm14 = vweird.f32 %v1266_v51 }
 0x6a7   :  { %1725 = vrcp.f32 %v1267_v53  ;;  %v1300_v12 = vand.u32 2147483648, %v1267_v53  ;;  %v1298_v20 = vand.u32 2147483647, %v1267_v53  ;;  %vm1294_vm15 = vweird.f32 %v1267_v53 }
 0x6a8   :  { %1727 = vpow2.f32 %v1603_v15  ;;  %v1286_v21 = vor.u32 1.1754944e-38, %v1285_v63  ;;  %vm1284_vm2 = vcmp.eq.f32.partialorder %v1283_v52, 8.507059e+37 }
 0x6a9   :  { %1729 = vpow2.f32 %v1604_v43  ;;  %v1301_v48 = vor.u32 1.1754944e-38, %v1300_v12  ;;  %vm1299_vm4 = vcmp.eq.f32.partialorder %v1298_v20, 8.507059e+37 }
 0x6aa   :  { %v1204_v52 = vpop.f32.mrf.mxu2 }
 0x6ac   :  { %v1724_v57 = vpop.eup %1723 }
 0x6ad   :  { %v1726_v55 = vpop.eup %1725  ;;  %v1275_v60 = vmul.f32 %v1724_v57, %v1266_v51  ;;  %vm1280_vm12 = vweird.f32 %v1724_v57 }
 0x6ae   :  { %v1728_v62 = vpop.eup %1727  ;;  %v1290_v56 = vmul.f32 %v1726_v55, %v1267_v53  ;;  %vm1295_vm13 = vweird.f32 %v1726_v55  ;;  %vm1281_vm1 = vmor %vm1279_vm14, %vm1280_vm12 }
 0x6af   :  { %v1730_v2 = vpop.eup %1729  ;;  %v1276_v34 = vsub.f32 1.0, %v1275_v60  ;;  %v2631_v3 = vadd.f32 1.0, %v1728_v62  ;;  %vm1296_vm3 = vmor %vm1294_vm15, %vm1295_vm13 }
 0x6b0   :  { %v1291_v59 = vsub.f32 1.0, %v1290_v56  ;;  %v2633_v8 = vadd.f32 1.0, %v1730_v2 }
 0x6b1   :  { %v1277_v54 = vmul.f32 %v1724_v57, %v1276_v34  ;;  %1731 = vrcp.f32 %v2631_v3  ;;  %v2636_v13 = vpop.f32.mrf.mxu0  ;;  %v2638_v4 = vpop.f32.mrf.mxu1  ;;  %v1313_v9 = vand.u32 2147483647, %v2631_v3  ;;  %vm1309_vm7 = vweird.f32 %v2631_v3 }
 0x6b2   :  { %v1292_v18 = vmul.f32 %v1726_v55, %v1291_v59  ;;  %1733 = vrcp.f32 %v2633_v8  ;;  %v1605_v7 = vmul.f32 -1.442695, %v2636_v13  ;;  %v1606_v23 = vmul.f32 -1.442695, %v2638_v4 }
 0x6b3   :  { %v1278_v36 = vadd.f32 %v1724_v57, %v1277_v54  ;;  %v1328_v44 = vand.u32 2147483647, %v2633_v8  ;;  %v1330_v29 = vand.u32 2147483648, %v2633_v8  ;;  %vm1324_vm9 = vweird.f32 %v2633_v8 }
 0x6b4   :  { %v1293_v6 = vadd.f32 %v1726_v55, %v1292_v18  ;;  %1735 = vpow2.f32 %v1605_v7  ;;  %vm1314_vm10 = vcmp.eq.f32.partialorder %v1313_v9, 8.507059e+37 }
 0x6b5   :  { %v1282_v31 = vsel %vm1281_vm1, %v1724_v57, %v1278_v36  ;;  %1737 = vpow2.f32 %v1606_v23  ;;  %v1331_v57 = vor.u32 1.1754944e-38, %v1330_v29  ;;  %vm1329_vm12 = vcmp.eq.f32.partialorder %v1328_v44, 8.507059e+37 }
 0x6b6   :  { %v1287_v26 = vsel %vm1284_vm2, %v1286_v21, %v1282_v31  ;;  %v1297_v28 = vsel %vm1296_vm3, %v1726_v55, %v1293_v6 }
 0x6b7   :  { %v1732_v30 = vpop.eup %1731  ;;  %v1394_v0 = vmul.f32 %v1287_v26, %v2601_v33  ;;  %v1302_v42 = vsel %vm1299_vm4, %v1301_v48, %v1297_v28 }
 0x6b8   :  { %v1734_v38 = vpop.eup %1733  ;;  %v1395_v5 = vmul.f32 %v1302_v42, %v2603_v39  ;;  %v1305_v17 = vmul.f32 %v1732_v30, %v2631_v3  ;;  %v1315_v39 = vand.u32 2147483648, %v2631_v3  ;;  %vm1310_vm5 = vweird.f32 %v1732_v30 }
 0x6b9   :  { %v1402_v1 = vmul.f32 %v1394_v0, %v1201_v25  ;;  %v1320_v27 = vmul.f32 %v1734_v38, %v2633_v8  ;;  %v2647_v32 = vpop.f32.mrf.mxu0  ;;  %v2649_v58 = vpop.f32.mrf.mxu1  ;;  %vm1325_vm6 = vweird.f32 %v1734_v38  ;;  %vm1311_vm8 = vmor %vm1309_vm7, %vm1310_vm5 }
 0x6ba   :  { %v1403_v61 = vmul.f32 %v1395_v5, %v1230_v22  ;;  %v1306_v10 = vsub.f32 1.0, %v1305_v17  ;;  %v1607_v11 = vmul.f32 -1.442695, %v2647_v32  ;;  %v1608_v33 = vmul.f32 -1.442695, %v2649_v58  ;;  %v1736_v35 = vpop.eup %1735  ;;  %vm1326_vm11 = vmor %vm1324_vm9, %vm1325_vm6  ;;  %v1233_v8 = vpop.f32.mrf.mxu3 }
 0x6bb   :  { %v1321_v40 = vsub.f32 1.0, %v1320_v27  ;;  %1458 = vmatmul.f32.vlgmr.msra.gmra.mxu0 %v1402_v1  ;;  %v1738_v14 = vpop.eup %1737  ;;  %v1270_v47 = vadd.f32 1.0, %v1736_v35  ;;  %v1316_v15 = vor.u32 1.1754944e-38, %v1315_v39  ;;  %v1207_v22 = vpop.f32.mrf.mxu2 }
 0x6bc   :  { %v1307_v45 = vmul.f32 %v1732_v30, %v1306_v10  ;;  %1739 = vpow2.f32 %v1607_v11  ;;  %1487 = vmatmul.f32.vlgmr.msrb.gmra.mxu1 %v1403_v61  ;;  %v1271_v51 = vadd.f32 1.0, %v1738_v14 }
 0x6bd   :  { %v1322_v46 = vmul.f32 %v1734_v38, %v1321_v40  ;;  %1741 = vpow2.f32 %v1608_v33  ;;  %v1345_v6 = vand.u32 2147483648, %v1270_v47  ;;  %vm1339_vm14 = vweird.f32 %v1270_v47 }
 0x6be   :  { %v1308_v50 = vadd.f32 %v1732_v30, %v1307_v45  ;;  %1743 = vrcp.f32 %v1270_v47  ;;  %v1358_v23 = vand.u32 2147483647, %v1271_v51  ;;  %v1360_v31 = vand.u32 2147483648, %v1271_v51 }
 0x6bf   :  { %v1323_v53 = vadd.f32 %v1734_v38, %v1322_v46  ;;  %1745 = vrcp.f32 %v1271_v51  ;;  %vm1354_vm15 = vweird.f32 %v1271_v51  ;;  %v1346_v42 = vor.u32 1.1754944e-38, %v1345_v6 }
 0x6c0   :  { %v1312_v43 = vsel %vm1311_vm8, %v1732_v30, %v1308_v50  ;;  %vm1359_vm4 = vcmp.eq.f32.partialorder %v1358_v23, 8.507059e+37  ;;  %v1361_v25 = vor.u32 1.1754944e-38, %v1360_v31 }
 0x6c1   :  { %v1317_v55 = vsel %vm1314_vm10, %v1316_v15, %v1312_v43  ;;  %v1327_v60 = vsel %vm1326_vm11, %v1734_v38, %v1323_v53 }
 0x6c2   :  { %v1740_v62 = vpop.eup %1739  ;;  %v1396_v56 = vmul.f32 %v1317_v55, %v2625_v49  ;;  %v1332_v2 = vsel %vm1329_vm12, %v1331_v57, %v1327_v60  ;;  %v1236_v27 = vpop.f32.mrf.mxu3 }
 0x6c3   :  { %v1742_v34 = vpop.eup %1741  ;;  %v1397_v3 = vmul.f32 %v1332_v2, %v2627_v41  ;;  %v2661_v63 = vadd.f32 1.0, %v1740_v62  ;;  %v1343_v41 = vand.u32 2147483647, %v1270_v47 }
 0x6c4   :  { %v1404_v59 = vmul.f32 %v1396_v56, %v1204_v52  ;;  %v2663_v54 = vadd.f32 1.0, %v1742_v34  ;;  %v1744_v12 = vpop.eup %1743  ;;  %v1210_v56 = vpop.f32.mrf.mxu2 }
 0x6c5   :  { %v1405_v18 = vmul.f32 %v1397_v3, %v1233_v8  ;;  %1747 = vrcp.f32 %v2661_v63  ;;  %v1746_v20 = vpop.eup %1745  ;;  %v1335_v36 = vmul.f32 %v1744_v12, %v1270_v47  ;;  %vm1340_vm13 = vweird.f32 %v1744_v12 }
 0x6c6   :  { %1749 = vrcp.f32 %v2663_v54  ;;  %1461 = vmatmul.f32.gmra.mxu0 %v1404_v59  ;;  %v1350_v49 = vmul.f32 %v1746_v20, %v1271_v51  ;;  %vm1355_vm1 = vweird.f32 %v1746_v20  ;;  %vm1344_vm2 = vcmp.eq.f32.partialorder %v1343_v41, 8.507059e+37  ;;  %vm1341_vm3 = vmor %vm1339_vm14, %vm1340_vm13 }
 0x6c7   :  { %1490 = vmatmul.f32.gmra.mxu1 %v1405_v18  ;;  %v1336_v21 = vsub.f32 1.0, %v1335_v36  ;;  %vm1356_vm5 = vmor %vm1354_vm15, %vm1355_vm1  ;;  %v1373_v10 = vand.u32 2147483647, %v2661_v63  ;;  %v1375_v11 = vand.u32 2147483648, %v2661_v63  ;;  %v1390_v40 = vand.u32 2147483648, %v2663_v54 }
 0x6c8   :  { %v1351_v7 = vsub.f32 1.0, %v1350_v49  ;;  %v1388_v46 = vand.u32 2147483647, %v2663_v54  ;;  %vm1369_vm8 = vweird.f32 %v2661_v63  ;;  %vm1384_vm10 = vweird.f32 %v2663_v54 }
 0x6c9   :  { %v1337_v48 = vmul.f32 %v1744_v12, %v1336_v21  ;;  %v1376_v15 = vor.u32 1.1754944e-38, %v1375_v11  ;;  %vm1374_vm11 = vcmp.eq.f32.partialorder %v1373_v10, 8.507059e+37  ;;  %v1391_v43 = vor.u32 1.1754944e-38, %v1390_v40 }
 0x6ca   :  { %v1352_v28 = vmul.f32 %v1746_v20, %v1351_v7  ;;  %vm1389_vm13 = vcmp.eq.f32.partialorder %v1388_v46, 8.507059e+37  ;;  %v1239_v34 = vpop.f32.mrf.mxu3 }
 0x6cb   :  { %v1748_v26 = vpop.eup %1747  ;;  %v1338_v0 = vadd.f32 %v1744_v12, %v1337_v48 }
 0x6cc   :  { %v1750_v30 = vpop.eup %1749  ;;  %v1365_v38 = vmul.f32 %v1748_v26, %v2661_v63  ;;  %v1353_v5 = vadd.f32 %v1746_v20, %v1352_v28  ;;  %vm1370_vm6 = vweird.f32 %v1748_v26 }
 0x6cd   :  { %v1380_v17 = vmul.f32 %v1750_v30, %v2663_v54  ;;  %v1342_v1 = vsel %vm1341_vm3, %v1744_v12, %v1338_v0  ;;  %vm1385_vm7 = vweird.f32 %v1750_v30  ;;  %vm1371_vm9 = vmor %vm1369_vm8, %vm1370_vm6 }
 0x6ce   :  { %v1366_v61 = vsub.f32 1.0, %v1365_v38  ;;  %v1347_v33 = vsel %vm1344_vm2, %v1346_v42, %v1342_v1  ;;  %v1357_v9 = vsel %vm1356_vm5, %v1746_v20, %v1353_v5  ;;  %vm1386_vm12 = vmor %vm1384_vm10, %vm1385_vm7 }
 0x6cf   :  { %v1381_v39 = vsub.f32 1.0, %v1380_v17  ;;  %v1398_v44 = vmul.f32 %v1347_v33, %v2636_v13  ;;  %v1362_v35 = vsel %vm1359_vm4, %v1361_v25, %v1357_v9 }
 0x6d0   :  { %v1367_v45 = vmul.f32 %v1748_v26, %v1366_v61  ;;  %v1399_v29 = vmul.f32 %v1362_v35, %v2638_v4 }
 0x6d1   :  { %v1382_v14 = vmul.f32 %v1750_v30, %v1381_v39  ;;  %v1406_v47 = vmul.f32 %v1398_v44, %v1207_v22 }
 0x6d2   :  { %v1368_v50 = vadd.f32 %v1748_v26, %v1367_v45  ;;  %v1407_v51 = vmul.f32 %v1399_v29, %v1236_v27 }
 0x6d3   :  { %v1383_v53 = vadd.f32 %v1750_v30, %v1382_v14  ;;  %1464 = vmatmul.f32.gmra.mxu0 %v1406_v47 }
 0x6d4   :  { %v1372_v13 = vsel %vm1371_vm9, %v1748_v26, %v1368_v50  ;;  %1493 = vmatmul.f32.gmra.mxu1 %v1407_v51 }
 0x6d5   :  { %v1377_v4 = vsel %vm1374_vm11, %v1376_v15, %v1372_v13  ;;  %v1387_v57 = vsel %vm1386_vm12, %v1750_v30, %v1383_v53 }
 0x6d6   :  { %v1400_v55 = vmul.f32 %v1377_v4, %v2647_v32  ;;  %v1392_v60 = vsel %vm1389_vm13, %v1391_v43, %v1387_v57 }
 0x6d7   :  { %v1401_v62 = vmul.f32 %v1392_v60, %v2649_v58 }
 0x6d8   :  { %v1408_v2 = vmul.f32 %v1400_v55, %v1210_v56 }
 0x6d9   :  { %v1409_v3 = vmul.f32 %v1401_v62, %v1239_v34 }
 0x6db   :  { %1467 = vmatmul.f32.gmra.mxu0 %v1408_v2 }
 0x6dc   :  { %1496 = vmatmul.f32.gmra.mxu1 %v1409_v3 }
 0x738   :  { %v1459_v52 = vpop.f32.mrf.mxu0 }
 0x739   :  { %v1488_v63 = vpop.f32.mrf.mxu1 }
 0x73a   :  { %v1489_v59 = vadd.f32 %v1488_v63, %v1459_v52 }
 0x73c   :  { %v1500_v8 = vadd.f32 %v1489_v59, %v2383_v16 }
 0x73e   :  { %1504 = vst.msk [vmem:[#allocation11] sm:$0xff] %vm119_vm0, %v1500_v8 }
 0x743   :  { %v1462_v54 = vpop.f32.mrf.mxu0 }
 0x744   :  { %v1491_v12 = vpop.f32.mrf.mxu1 }
 0x745   :  { %v1492_v18 = vadd.f32 %v1491_v12, %v1462_v54 }
 0x747   :  { %v1501_v32 = vadd.f32 %v1492_v18, %v2388_v24 }
 0x749   :  { %1505 = vst.msk [vmem:[#allocation11 + $0x8] sm:$0xff] %vm119_vm0, %v1501_v32 }
 0x750   :  { %v1465_v58 = vpop.f32.mrf.mxu0 }
 0x751   :  { %v1494_v20 = vpop.f32.mrf.mxu1 }
 0x752   :  { %v1495_v36 = vadd.f32 %v1494_v20, %v1465_v58 }
 0x754   :  { %v1502_v49 = vadd.f32 %v1495_v36, %v2393_v37 }
 0x756   :  { %1506 = vst.msk [vmem:[#allocation11 + $0x10] sm:$0xff] %vm119_vm0, %v1502_v49 }
 0x758   :  { %v1468_v21 = vpop.f32.mrf.mxu0 }
 0x759   :  { %v1497_v41 = vpop.f32.mrf.mxu1 }
 0x75a   :  { %v1498_v16 = vadd.f32 %v1497_v41, %v1468_v21 }
 0x75c   :  { %v1503_v24 = vadd.f32 %v1498_v16, %v2398_v19 }
 0x75e   :  { %1507 = vst.msk [vmem:[#allocation11 + $0x18] sm:$0xff] %vm119_vm0, %v1503_v24 }
 0x75f   :  { %1520 = dma.vmem_to_hbm [thread:$0]  %s1513_s15, 512, %s1515_s18, [#allocation4], %s1911_s1, %s1911_s1, %s1912_s24  }
 0x760   :  { %1905 = dma.done.wait [#allocation4], 512  }
 0x761   :  { %1906 = vsyncadd [#allocation4], 4294966784 }
 0x762   :  { %1525 = vsyncpa [#allocation3], 1 }
 0x763   :  { %1526 = vsyncpa [#allocation6], 1 }
 0x764   :  { %1527 = vsyncpa [#allocation9], 1 }
 0x765   :  { %1528 = vsyncpa [#allocation4], 1 }

</bundles_post_ra>
